<compile_context>
chip_gen: v5e
topology: v5e:2x2
jax: 0.10.0
libtpu: 0.0.40
codegen_flags: <defaults>
</compile_context>

<pallas_src>
import functools

import jax
import jax.numpy as jnp
from jax.experimental import pallas as pl
from jax.experimental.pallas import tpu as pltpu

D_PAD = 128   # padded layer-1 input width (one 128-lane tile)
H = 256       # hidden width


def critic_kernel(x_ref, a_ref, w1_ref, b1_ref, w2_ref, b2_ref,
                  w3_ref, b3_ref, w4_ref, b4_ref, o_ref, inp_ref,
                  *, d_xg, d_in, bf16_epilogue):
    # Fused concat + zero-pad straight into a bf16 VMEM scratch.
    # (1/action_range is already folded into the action rows of w1.)
    inp_ref[:, 0:d_xg] = x_ref[...].astype(jnp.bfloat16)
    inp_ref[:, d_xg:d_in] = a_ref[...].astype(jnp.bfloat16)
    if d_in < D_PAD:
        # Zero only the padded tail lanes, every step (do NOT gate this on
        # program_id while the batch axis is "parallel": each TensorCore has
        # its own scratch and only one of them sees program 0).
        inp_ref[:, d_in:] = jnp.zeros(
            (inp_ref.shape[0], D_PAD - d_in), jnp.bfloat16)

    def epilogue(acc_f32, b_ref):
        # bias + ReLU, producing the bf16 input of the next MXU pass.
        if bf16_epilogue:   # packed bf16 VPU path (v6e/v7x)
            return jnp.maximum(acc_f32.astype(jnp.bfloat16)
                               + b_ref[...].astype(jnp.bfloat16), 0)
        return jnp.maximum(acc_f32 + b_ref[...], 0.0).astype(jnp.bfloat16)

    # Layer 1: (TB,128)bf16 @ (128,256)bf16 -> f32 accum.
    h = epilogue(jnp.dot(inp_ref[...], w1_ref[...],
                         preferred_element_type=jnp.float32), b1_ref)
    # Layer 2: (TB,256) @ (256,256)
    h = epilogue(jnp.dot(h, w2_ref[...],
                         preferred_element_type=jnp.float32), b2_ref)
    # Layer 3: (TB,256) @ (256,256)
    h = epilogue(jnp.dot(h, w3_ref[...],
                         preferred_element_type=jnp.float32), b3_ref)
    # Head: 256 -> 1 as mul + lane reduction against the f32 w4 row.
    # (No padded 128-wide matmul, and only a (TB,1) writeback.)
    o_ref[...] = jnp.sum(h * w4_ref[...], axis=-1, keepdims=True) + b4_ref[...]


def init_params(key, obs_dim, goal_dim, action_dim, hidden=H):
    """Deterministic synthetic params matching nn.Linear shapes (stored (in, out))."""
    d_in = obs_dim + goal_dim + action_dim
    dims = [(d_in, hidden), (hidden, hidden), (hidden, hidden), (hidden, 1)]
    params = []
    for fan_in, fan_out in dims:
        kw, kb, key = jax.random.split(key, 3)
        bound = 1.0 / jnp.sqrt(fan_in)
        w = jax.random.uniform(kw, (fan_in, fan_out), jnp.float32, -bound, bound)
        b = jax.random.uniform(kb, (fan_out,), jnp.float32, -bound, bound)
        params.append((w, b))
    return params


def prepare_params(params, action_dim, action_range):
    """One-time (cold path) prep: fold 1/action_range into w1, pad, cast bf16.

    Zero-padding the extra w1 rows is exact because the padded lanes of the
    in-kernel input scratch are zeroed.  w4 is kept as a (1,256) f32 row for
    the mul+reduce head; biases stay f32 (cast in-kernel if needed).
    """
    (w1, b1), (w2, b2), (w3, b3), (w4, b4) = params
    d_in = w1.shape[0]
    d_xg = d_in - action_dim
    # Fold the action scaling into w1's action rows (in f32, before bf16 cast).
    w1_scaled = w1.at[d_xg:, :].multiply(1.0 / float(action_range))
    w1_p = (jnp.zeros((D_PAD, H), jnp.float32).at[:d_in, :].set(w1_scaled)
            ).astype(jnp.bfloat16)
    w2_p = w2.astype(jnp.bfloat16)
    w3_p = w3.astype(jnp.bfloat16)
    w4_row = w4.reshape(1, H).astype(jnp.float32)     # (256,1) -> (1,256)
    b4_s = b4.reshape(1, 1).astype(jnp.float32)
    return (w1_p, b1.reshape(1, H).astype(jnp.float32),
            w2_p, b2.reshape(1, H).astype(jnp.float32),
            w3_p, b3.reshape(1, H).astype(jnp.float32),
            w4_row, b4_s)


def _choose_tile(B, tb_max=512):
    """Batch tile: big enough to amortize per-grid-step overhead, but keep
    >=2 grid steps when the batch allows (v7x: two TensorCores share the
    'parallel' axis).  Tiles are multiples of 16 (bf16 sublane packing)."""
    def up16(n):
        return max(16, -(-n // 16) * 16)
    b_pad = up16(B)
    if b_pad <= 2 * tb_max:
        if B <= 32:
            return b_pad                      # tiny batch: single small tile
        return up16(-(-b_pad // 2))           # two roughly-equal tiles
    return tb_max


def critic_forward(x, action, prep, action_range, *, tb=None, bf16_epilogue=True):
    """x: (B, obs_dim+goal_dim), action: (B, action_dim) -> (B, 1) float32.

    action_range is unused at call time (already folded into prep); kept in the
    signature for API parity with the PyTorch module.
    """
    del action_range  # folded into w1 in prepare_params
    x = x.astype(jnp.float32)
    action = action.astype(jnp.float32)
    B, d_xg = x.shape
    d_a = action.shape[1]
    d_in = d_xg + d_a
    assert d_in <= D_PAD, "concat feature dim must fit in one 128-lane tile"

    if tb is None:
        tb = _choose_tile(B)
    n_tiles = pl.cdiv(B, tb)
    b_pad = n_tiles * tb
    if b_pad != B:  # pad batch up to a whole number of tiles (rows sliced off below)
        x = jnp.pad(x, ((0, b_pad - B), (0, 0)))
        action = jnp.pad(action, ((0, b_pad - B), (0, 0)))

    w1_p, b1_p, w2_p, b2_p, w3_p, b3_p, w4_row, b4_s = prep
    kernel = functools.partial(critic_kernel, d_xg=d_xg, d_in=d_in,
                               bf16_epilogue=bf16_epilogue)

    out_padded = pl.pallas_call(
        kernel,
        out_shape=jax.ShapeDtypeStruct((b_pad, 1), jnp.float32),
        grid=(n_tiles,),
        in_specs=[
            pl.BlockSpec((tb, d_xg), lambda i: (i, 0)),    # obs||goal slice
            pl.BlockSpec((tb, d_a),  lambda i: (i, 0)),    # action slice
            pl.BlockSpec((D_PAD, H), lambda i: (0, 0)),    # w1 (padded, bf16, scaled) - resident
            pl.BlockSpec((1, H),     lambda i: (0, 0)),    # b1 (f32)
            pl.BlockSpec((H, H),     lambda i: (0, 0)),    # w2 (bf16) - resident
            pl.BlockSpec((1, H),     lambda i: (0, 0)),    # b2
            pl.BlockSpec((H, H),     lambda i: (0, 0)),    # w3 (bf16) - resident
            pl.BlockSpec((1, H),     lambda i: (0, 0)),    # b3
            pl.BlockSpec((1, H),     lambda i: (0, 0)),    # w4 row (f32) - resident
            pl.BlockSpec((1, 1),     lambda i: (0, 0)),    # b4 scalar
        ],
        out_specs=pl.BlockSpec((tb, 1), lambda i: (i, 0)),
        scratch_shapes=[pltpu.VMEM((tb, D_PAD), jnp.bfloat16)],  # fused bf16 input tile
        compiler_params=pltpu.CompilerParams(
            dimension_semantics=("parallel",)),  # batch axis -> both TCs on v7x
    )(x, action, w1_p, b1_p, w2_p, b2_p, w3_p, b3_p, w4_row, b4_s)

    return out_padded[:B]


def critic_forward_ref_f32(x, action, params, action_range):
    """Pure-JAX full-f32 reference matching the PyTorch forward."""
    h = jnp.concatenate([x, action / action_range], axis=-1).astype(jnp.float32)
    (w1, b1), (w2, b2), (w3, b3), (w4, b4) = params
    h = jnp.maximum(h @ w1 + b1, 0.0)
    h = jnp.maximum(h @ w2 + b2, 0.0)
    h = jnp.maximum(h @ w3 + b3, 0.0)
    return h @ w4 + b4


def critic_forward_ref_bf16(x, action, params, action_range, bf16_epilogue=True):
    """Pure-JAX reference mirroring the kernel's bf16/f32 choreography."""
    (w1, b1), (w2, b2), (w3, b3), (w4, b4) = params
    d_xg = x.shape[1]
    w1s = w1.at[d_xg:, :].multiply(1.0 / float(action_range))
    h = jnp.concatenate([x, action], axis=-1).astype(jnp.bfloat16)

    def layer(h, w, b):
        acc = jnp.dot(h, w.astype(jnp.bfloat16),
                      preferred_element_type=jnp.float32)
        if bf16_epilogue:
            return jnp.maximum(acc.astype(jnp.bfloat16)
                               + b.astype(jnp.bfloat16), 0)
        return jnp.maximum(acc + b.astype(jnp.float32), 0.0).astype(jnp.bfloat16)

    h = layer(h, w1s, b1)
    h = layer(h, w2, b2)
    h = layer(h, w3, b3)
    w4_row = w4.reshape(1, -1).astype(jnp.float32)
    return jnp.sum(h * w4_row, axis=-1, keepdims=True) + b4.reshape(1, 1)


if __name__ == "__main__":
    # Fetch-reach-like dims; batch chosen so the tile chooser produces 2 grid
    # steps (tb=160, b_pad=320) and exercises batch padding (B % tb != 0).
    obs_dim, goal_dim, action_dim = 10, 3, 4
    action_range = 2.0
    B = 300

    key = jax.random.PRNGKey(0)
    kx, ka, kp = jax.random.split(key, 3)
    x = jax.random.normal(kx, (B, obs_dim + goal_dim), jnp.float32)
    action = jax.random.normal(ka, (B, action_dim), jnp.float32)

    params = init_params(kp, obs_dim, goal_dim, action_dim)
    prep = jax.block_until_ready(
        prepare_params(params, action_dim=action_dim, action_range=action_range))

    q = critic_forward(x, action, prep, action_range)
    q = jax.block_until_ready(q)
    assert q.shape == (B, 1), q.shape

    q_ref_bf16 = critic_forward_ref_bf16(x, action, params, action_range)
    q_ref_f32 = critic_forward_ref_f32(x, action, params, action_range)
    # Same bf16/f32 dtype choreography as the kernel -> should match closely.
    assert jnp.allclose(q, q_ref_bf16, atol=2e-2, rtol=2e-2)
    # Loose sanity check against the full-f32 PyTorch-equivalent math.
    assert jnp.allclose(q, q_ref_f32, atol=1e-1, rtol=1e-1)

    print("KERNEL_OK")
</pallas_src>

<mosaic_0001>
module attributes {stable_mosaic.version = 11 : i64} {
  func.func @critic_kernel(%arg0: i32, %arg1: memref<160x13xf32, #tpu.memory_space<vmem>>, %arg2: memref<160x4xf32, #tpu.memory_space<vmem>>, %arg3: memref<128x256xbf16, #tpu.memory_space<vmem>>, %arg4: memref<1x256xf32, #tpu.memory_space<vmem>>, %arg5: memref<256x256xbf16, #tpu.memory_space<vmem>>, %arg6: memref<1x256xf32, #tpu.memory_space<vmem>>, %arg7: memref<256x256xbf16, #tpu.memory_space<vmem>>, %arg8: memref<1x256xf32, #tpu.memory_space<vmem>>, %arg9: memref<1x256xf32, #tpu.memory_space<vmem>>, %arg10: memref<1x1xf32, #tpu.memory_space<vmem>>, %arg11: memref<160x1xf32, #tpu.memory_space<vmem>>, %arg12: memref<160x128xbf16, #tpu.memory_space<vmem>>) attributes {dimension_semantics = [#tpu.dimension_semantics<parallel>], iteration_bounds = array<i64: 2>, scalar_prefetch = 0 : i64, scratch_operands = 1 : i64, tpu.core_type = #tpu.core_type<tc>, window_params = [{transform_indices = @transform_0, window_bounds = array<i64: 160, 13>}, {transform_indices = @transform_1, window_bounds = array<i64: 160, 4>}, {pipeline_mode = #tpu.pipeline_mode<synchronous>, transform_indices = @transform_2, window_bounds = array<i64: 128, 256>}, {pipeline_mode = #tpu.pipeline_mode<synchronous>, transform_indices = @transform_3, window_bounds = array<i64: 1, 256>}, {pipeline_mode = #tpu.pipeline_mode<synchronous>, transform_indices = @transform_4, window_bounds = array<i64: 256, 256>}, {pipeline_mode = #tpu.pipeline_mode<synchronous>, transform_indices = @transform_5, window_bounds = array<i64: 1, 256>}, {pipeline_mode = #tpu.pipeline_mode<synchronous>, transform_indices = @transform_6, window_bounds = array<i64: 256, 256>}, {pipeline_mode = #tpu.pipeline_mode<synchronous>, transform_indices = @transform_7, window_bounds = array<i64: 1, 256>}, {pipeline_mode = #tpu.pipeline_mode<synchronous>, transform_indices = @transform_8, window_bounds = array<i64: 1, 256>}, {pipeline_mode = #tpu.pipeline_mode<synchronous>, transform_indices = @transform_9, window_bounds = array<i64: 1, 1>}, {transform_indices = @transform_10, window_bounds = array<i64: 160, 1>}]} {
    %c0 = arith.constant 0 : index
    %c0_0 = arith.constant 0 : index
    %0 = vector.load %arg1[%c0, %c0_0] : memref<160x13xf32, #tpu.memory_space<vmem>>, vector<160x13xf32>
    %1 = arith.truncf %0 : vector<160x13xf32> to vector<160x13xbf16>
    %c0_1 = arith.constant 0 : index
    %c0_2 = arith.constant 0 : index
    %2 = vector.load %arg12[%c0_1, %c0_2] : memref<160x128xbf16, #tpu.memory_space<vmem>>, vector<160x13xbf16>
    tpu.vector_store %arg12[%c0_1, %c0_2], %1 {strides = array<i32>} : memref<160x128xbf16, #tpu.memory_space<vmem>>, vector<160x13xbf16>,
    %c0_3 = arith.constant 0 : index
    %c0_4 = arith.constant 0 : index
    %3 = vector.load %arg2[%c0_3, %c0_4] : memref<160x4xf32, #tpu.memory_space<vmem>>, vector<160x4xf32>
    %4 = arith.truncf %3 : vector<160x4xf32> to vector<160x4xbf16>
    %c0_5 = arith.constant 0 : index
    %c13 = arith.constant 13 : index
    %5 = vector.load %arg12[%c0_5, %c13] : memref<160x128xbf16, #tpu.memory_space<vmem>>, vector<160x4xbf16>
    tpu.vector_store %arg12[%c0_5, %c13], %4 {strides = array<i32>} : memref<160x128xbf16, #tpu.memory_space<vmem>>, vector<160x4xbf16>,
    %cst = arith.constant 0.000000e+00 : bf16
    %6 = vector.broadcast %cst : bf16 to vector<160x111xbf16>
    %c0_6 = arith.constant 0 : index
    %c17 = arith.constant 17 : index
    %7 = vector.load %arg12[%c0_6, %c17] : memref<160x128xbf16, #tpu.memory_space<vmem>>, vector<160x111xbf16>
    tpu.vector_store %arg12[%c0_6, %c17], %6 {strides = array<i32>} : memref<160x128xbf16, #tpu.memory_space<vmem>>, vector<160x111xbf16>,
    %c0_7 = arith.constant 0 : index
    %c0_8 = arith.constant 0 : index
    %8 = vector.load %arg12[%c0_7, %c0_8] : memref<160x128xbf16, #tpu.memory_space<vmem>>, vector<160x128xbf16>
    %c0_9 = arith.constant 0 : index
    %c0_10 = arith.constant 0 : index
    %9 = vector.load %arg3[%c0_9, %c0_10] : memref<128x256xbf16, #tpu.memory_space<vmem>>, vector<128x256xbf16>
    %cst_11 = arith.constant dense<0.000000e+00> : vector<160x256xf32>
    %10 = tpu.matmul %8, %9, %cst_11 {dimension_numbers = #tpu.dot_dimension_numbers<[1], [0], [0], [1], [0, 0, 1, 1], [], []>} : vector<160x128xbf16>, vector<128x256xbf16>, vector<160x256xf32> -> vector<160x256xf32>
    %11 = arith.truncf %10 : vector<160x256xf32> to vector<160x256xbf16>
    %c0_12 = arith.constant 0 : index
    %c0_13 = arith.constant 0 : index
    %12 = vector.load %arg4[%c0_12, %c0_13] : memref<1x256xf32, #tpu.memory_space<vmem>>, vector<1x256xf32>
    %13 = arith.truncf %12 : vector<1x256xf32> to vector<1x256xbf16>
    %14 = vector.broadcast %13 : vector<1x256xbf16> to vector<160x256xbf16>
    %15 = arith.addf %11, %14 : vector<160x256xbf16>
    %cst_14 = arith.constant 0.000000e+00 : bf16
    %16 = vector.broadcast %cst_14 : bf16 to vector<160x256xbf16>
    %17 = arith.maximumf %15, %16 : vector<160x256xbf16>
    %c0_15 = arith.constant 0 : index
    %c0_16 = arith.constant 0 : index
    %18 = vector.load %arg5[%c0_15, %c0_16] : memref<256x256xbf16, #tpu.memory_space<vmem>>, vector<256x256xbf16>
    %cst_17 = arith.constant dense<0.000000e+00> : vector<160x256xf32>
    %19 = tpu.matmul %17, %18, %cst_17 {dimension_numbers = #tpu.dot_dimension_numbers<[1], [0], [0], [1], [0, 0, 1, 1], [], []>} : vector<160x256xbf16>, vector<256x256xbf16>, vector<160x256xf32> -> vector<160x256xf32>
    %20 = arith.truncf %19 : vector<160x256xf32> to vector<160x256xbf16>
    %c0_18 = arith.constant 0 : index
    %c0_19 = arith.constant 0 : index
    %21 = vector.load %arg6[%c0_18, %c0_19] : memref<1x256xf32, #tpu.memory_space<vmem>>, vector<1x256xf32>
    %22 = arith.truncf %21 : vector<1x256xf32> to vector<1x256xbf16>
    %23 = vector.broadcast %22 : vector<1x256xbf16> to vector<160x256xbf16>
    %24 = arith.addf %20, %23 : vector<160x256xbf16>
    %cst_20 = arith.constant 0.000000e+00 : bf16
    %25 = vector.broadcast %cst_20 : bf16 to vector<160x256xbf16>
    %26 = arith.maximumf %24, %25 : vector<160x256xbf16>
    %c0_21 = arith.constant 0 : index
    %c0_22 = arith.constant 0 : index
    %27 = vector.load %arg7[%c0_21, %c0_22] : memref<256x256xbf16, #tpu.memory_space<vmem>>, vector<256x256xbf16>
    %cst_23 = arith.constant dense<0.000000e+00> : vector<160x256xf32>
    %28 = tpu.matmul %26, %27, %cst_23 {dimension_numbers = #tpu.dot_dimension_numbers<[1], [0], [0], [1], [0, 0, 1, 1], [], []>} : vector<160x256xbf16>, vector<256x256xbf16>, vector<160x256xf32> -> vector<160x256xf32>
    %29 = arith.truncf %28 : vector<160x256xf32> to vector<160x256xbf16>
    %c0_24 = arith.constant 0 : index
    %c0_25 = arith.constant 0 : index
    %30 = vector.load %arg8[%c0_24, %c0_25] : memref<1x256xf32, #tpu.memory_space<vmem>>, vector<1x256xf32>
    %31 = arith.truncf %30 : vector<1x256xf32> to vector<1x256xbf16>
    %32 = vector.broadcast %31 : vector<1x256xbf16> to vector<160x256xbf16>
    %33 = arith.addf %29, %32 : vector<160x256xbf16>
    %cst_26 = arith.constant 0.000000e+00 : bf16
    %34 = vector.broadcast %cst_26 : bf16 to vector<160x256xbf16>
    %35 = arith.maximumf %33, %34 : vector<160x256xbf16>
    %c0_27 = arith.constant 0 : index
    %c0_28 = arith.constant 0 : index
    %36 = vector.load %arg9[%c0_27, %c0_28] : memref<1x256xf32, #tpu.memory_space<vmem>>, vector<1x256xf32>
    %37 = arith.extf %35 : vector<160x256xbf16> to vector<160x256xf32>
    %38 = vector.broadcast %36 : vector<1x256xf32> to vector<160x256xf32>
    %39 = arith.mulf %37, %38 : vector<160x256xf32>
    %cst_29 = arith.constant dense<0.000000e+00> : vector<160xf32>
    %40 = vector.multi_reduction <add>, %39, %cst_29 [1] : vector<160x256xf32> to vector<160xf32>
    %41 = vector.shape_cast %40 : vector<160xf32> to vector<160x1xf32>
    %c0_30 = arith.constant 0 : index
    %c0_31 = arith.constant 0 : index
    %42 = vector.load %arg10[%c0_30, %c0_31] : memref<1x1xf32, #tpu.memory_space<vmem>>, vector<1x1xf32>
    %43 = vector.broadcast %42 : vector<1x1xf32> to vector<160x1xf32>
    %44 = arith.addf %41, %43 : vector<160x1xf32>
    %c0_32 = arith.constant 0 : index
    %c0_33 = arith.constant 0 : index
    %45 = vector.load %arg11[%c0_32, %c0_33] : memref<160x1xf32, #tpu.memory_space<vmem>>, vector<160x1xf32>
    tpu.vector_store %arg11[%c0_32, %c0_33], %44 {strides = array<i32>} : memref<160x1xf32, #tpu.memory_space<vmem>>, vector<160x1xf32>,
    return
  }
  func.func @transform_0(%arg0: i32) -> (i32, i32) {
    %c0_i32 = arith.constant 0 : i32
    %c0_i32_0 = arith.constant 0 : i32
    return %arg0, %c0_i32 : i32, i32
  }
  func.func @transform_1(%arg0: i32) -> (i32, i32) {
    %c0_i32 = arith.constant 0 : i32
    %c0_i32_0 = arith.constant 0 : i32
    return %arg0, %c0_i32 : i32, i32
  }
  func.func @transform_2(%arg0: i32) -> (i32, i32) {
    %c0_i32 = arith.constant 0 : i32
    %c0_i32_0 = arith.constant 0 : i32
    %c0_i32_1 = arith.constant 0 : i32
    return %c0_i32, %c0_i32_0 : i32, i32
  }
  func.func @transform_3(%arg0: i32) -> (i32, i32) {
    %c0_i32 = arith.constant 0 : i32
    %c0_i32_0 = arith.constant 0 : i32
    %c0_i32_1 = arith.constant 0 : i32
    return %c0_i32, %c0_i32_0 : i32, i32
  }
  func.func @transform_4(%arg0: i32) -> (i32, i32) {
    %c0_i32 = arith.constant 0 : i32
    %c0_i32_0 = arith.constant 0 : i32
    %c0_i32_1 = arith.constant 0 : i32
    return %c0_i32, %c0_i32_0 : i32, i32
  }
  func.func @transform_5(%arg0: i32) -> (i32, i32) {
    %c0_i32 = arith.constant 0 : i32
    %c0_i32_0 = arith.constant 0 : i32
    %c0_i32_1 = arith.constant 0 : i32
    return %c0_i32, %c0_i32_0 : i32, i32
  }
  func.func @transform_6(%arg0: i32) -> (i32, i32) {
    %c0_i32 = arith.constant 0 : i32
    %c0_i32_0 = arith.constant 0 : i32
    %c0_i32_1 = arith.constant 0 : i32
    return %c0_i32, %c0_i32_0 : i32, i32
  }
  func.func @transform_7(%arg0: i32) -> (i32, i32) {
    %c0_i32 = arith.constant 0 : i32
    %c0_i32_0 = arith.constant 0 : i32
    %c0_i32_1 = arith.constant 0 : i32
    return %c0_i32, %c0_i32_0 : i32, i32
  }
  func.func @transform_8(%arg0: i32) -> (i32, i32) {
    %c0_i32 = arith.constant 0 : i32
    %c0_i32_0 = arith.constant 0 : i32
    %c0_i32_1 = arith.constant 0 : i32
    return %c0_i32, %c0_i32_0 : i32, i32
  }
  func.func @transform_9(%arg0: i32) -> (i32, i32) {
    %c0_i32 = arith.constant 0 : i32
    %c0_i32_0 = arith.constant 0 : i32
    %c0_i32_1 = arith.constant 0 : i32
    return %c0_i32, %c0_i32_0 : i32, i32
  }
  func.func @transform_10(%arg0: i32) -> (i32, i32) {
    %c0_i32 = arith.constant 0 : i32
    %c0_i32_0 = arith.constant 0 : i32
    return %arg0, %c0_i32 : i32, i32
  }
}

</mosaic_0001>

<bundles_post_ra>
// kernel: tpu_custom_call.1
= control target key start
LH: loop header
LB: loop body
LE: loop exit
PB: predicated region body
PF: predicated region fallthrough
CT: control target
= control target key end

     0   :  { %s3301_s15 = smov 0   ;;  %s4208_s0 = inlined_call_operand.vmem [shape: f32[320,13], index: 0, kind: input, shape index: {}]   ;;  %s4209_s1 = inlined_call_operand.vmem [shape: f32[320,4], index: 1, kind: input, shape index: {}]   ;;  %s4210_s2 = inlined_call_operand.vmem [shape: bf16[128,256], index: 2, kind: input, shape index: {}]   ;;  %s4211_s3 = inlined_call_operand.vmem [shape: f32[1,256], index: 3, kind: input, shape index: {}]   ;;  %s4212_s4 = inlined_call_operand.vmem [shape: bf16[256,256], index: 4, kind: input, shape index: {}]   ;;  %s4213_s5 = inlined_call_operand.vmem [shape: f32[1,256], index: 5, kind: input, shape index: {}]   ;;  %s4214_s6 = inlined_call_operand.vmem [shape: bf16[256,256], index: 6, kind: input, shape index: {}]   ;;  %s4215_s7 = inlined_call_operand.vmem [shape: f32[1,256], index: 7, kind: input, shape index: {}]   ;;  %s4216_s8 = inlined_call_operand.vmem [shape: f32[1,256], index: 8, kind: input, shape index: {}]   ;;  %s4217_s9 = inlined_call_operand.<no memory space> [shape: f32[1,1], index: 9, kind: input, shape index: {}]   ;;  %s4218_s10 = inlined_call_operand.vmem [shape: f32[320,1], index: 10, kind: output, shape index: {}]  }
   0x1   :  { %v15_v0 = vstv %s4217_s9 }
   0x2   :  { %16 = vst [vmem:[#allocation3] sm:$0x1] %v15_v0 }
   0x3 LB: > { %s2746_s16 = sadd.s32 4294967295, %s3239_s15   ;;  %p2750_p0 = scmp.ge.s32.totalorder %s3239_s15, 1  ;;  %s3239_s15 = sphi %s3301_s15, %s22_s15  }
   0x4   : > { %p326_p1 = scmp.lt.s32.totalorder %s3239_s15, 3 }
   0x6   : > { %p327_p2 = pnand %p2750_p0, %p326_p1 }
   0x7   : > { %s369_s17 = smul.u32 (!%p327_p2), 20, %s2746_s16  ;;  %s3241_s21 = smov (!%p327_p2), 13  }
   0x8   : > { %330 = sbr.rel (%p327_p2) target bundleno = 876 (0x36c), region = 60 }
   0x9   : > { %p370_p3 = scmp.lt.s32.totalorder (!%p327_p2), %s369_s17, 39 }
   0xd   : > { %s4220_s17 = smov (!%p370_p3, %s369_s17), 39  ;;  %v2852_v16 = vld [vmem:[%s4210_s2 + $0x70] sm:$0xf]  ;;  %v3141_v17 = vld [vmem:[%s4210_s2 + $0x74] sm:$0xf0]  ;;  %vm428_vm0 = vcmask 101376  }
   0xe   : > { %s3309_s9 = sshll.u32 %s4220_s17, 3  ;;  %v2853_v18 = vor.u32 %v3141_v17, %v2852_v16  ;;  %v3140_v19 = vld [vmem:[%s4210_s2 + $0x74] sm:$0xf]  ;;  %v2854_v20 = vld [vmem:[%s4210_s2 + $0x78] sm:$0xf0]  ;;  %vm569_vm1 = vcmask 134248  }
   0xf   : > { %s3315_s20 = scalar_lea.vmem %s4209_s1, %s3309_s9  ;;  %v2844_v21 = vld [vmem:[%s4210_s2 + $0x60] sm:$0xf]  ;;  %v2857_v22 = vor.u32 %v3140_v19, %v2854_v20  ;;  %v3139_v23 = vld [vmem:[%s4210_s2 + $0x64] sm:$0xf0]  ;;  %v3138_v24 = vld [vmem:[%s4210_s2 + $0x64] sm:$0xf]  ;;  %s3389_s11 = scalar_lea.vmem %s4208_s0, %s3309_s9 }
  0x10   : > { %v449_v1 = vld [vmem:[%s3315_s20] sm:$0xff]  ;;  %v451_v2 = vld [vmem:[%s3315_s20 + $0x10] sm:$0xff]  ;;  %v450_v7 = vld [vmem:[%s3315_s20 + $0x8] sm:$0xff]  ;;  %787 = vmatpush.bf16.msra.mxu0 %v2853_v18  ;;  %v2845_v26 = vor.u32 %v3139_v23, %v2844_v21  ;;  %3206 = vmatpush.bf16.msra.mxu2 %v2853_v18  ;;  %vm590_vm2 = vcmask 1043592   ;;  %vm2657_vm3 = vcmask 7168  }
  0x11   : > { %v469_v3 = vpack.c.bf16 %v449_v1, %v449_v1  ;;  %v471_v4 = vpack.c.bf16 %v451_v2, %v451_v2  ;;  %v453_v5 = vld [vmem:[%s3315_s20 + $0x20] sm:$0xff]  ;;  %v452_v8 = vld [vmem:[%s3315_s20 + $0x18] sm:$0xff]  ;;  %v454_v9 = vld [vmem:[%s3315_s20 + $0x28] sm:$0xff]  ;;  %v470_v10 = vpack.c.bf16 %v450_v7, %v450_v7  ;;  %846 = vmatpush.bf16.msra.mxu1 %v2857_v22  ;;  %3214 = vmatpush.bf16.msra.mxu3 %v2857_v22 }
  0x12   : > { %v473_v6 = vpack.c.bf16 %v453_v5, %v453_v5  ;;  %v472_v11 = vpack.c.bf16 %v452_v8, %v452_v8  ;;  %v474_v12 = vpack.c.bf16 %v454_v9, %v454_v9  ;;  %v456_v13 = vld [vmem:[%s3315_s20 + $0x38] sm:$0xff]  ;;  %v455_v14 = vld [vmem:[%s3315_s20 + $0x30] sm:$0xff]  ;;  %v457_v15 = vld [vmem:[%s3315_s20 + $0x40] sm:$0xff] }
  0x13   : > { %509 = vrot.lane.b32.xlu0 %v469_v3, %s3241_s21  ;;  %513 = vrot.lane.b32.xlu1 %v471_v4, %s3241_s21  ;;  %v2846_v25 = vld [vmem:[%s4210_s2 + $0x68] sm:$0xf0]  ;;  %v476_v27 = vpack.c.bf16 %v456_v13, %v456_v13  ;;  %v475_v28 = vpack.c.bf16 %v455_v14, %v455_v14  ;;  %v2836_v29 = vld [vmem:[%s4210_s2 + $0x50] sm:$0xf]  ;;  %v477_v31 = vpack.c.bf16 %v457_v15, %v457_v15 }
  0x14   : > { %517 = vrot.lane.b32.xlu2 %v473_v6, %s3241_s21  ;;  %v3137_v30 = vld [vmem:[%s4210_s2 + $0x54] sm:$0xf0]  ;;  %v2849_v32 = vor.u32 %v3138_v24, %v2846_v25  ;;  %v3136_v33 = vld [vmem:[%s4210_s2 + $0x54] sm:$0xf]  ;;  %v2838_v34 = vld [vmem:[%s4210_s2 + $0x58] sm:$0xf0]  ;;  %788 = vmatpush.bf16.msra.mxu0 %v2845_v26 }
  0x15   : > { %v2837_v35 = vor.u32 %v3137_v30, %v2836_v29  ;;  %3207 = vmatpush.bf16.msra.mxu2 %v2845_v26  ;;  %v459_v36 = vld [vmem:[%s3315_s20 + $0x50] sm:$0xff]  ;;  %v458_v37 = vld [vmem:[%s3315_s20 + $0x48] sm:$0xff]  ;;  %v2841_v38 = vor.u32 %v3136_v33, %v2838_v34  ;;  %v460_v39 = vld [vmem:[%s3315_s20 + $0x58] sm:$0xff] }
  0x16   : > { %847 = vmatpush.bf16.msra.mxu1 %v2849_v32  ;;  %3215 = vmatpush.bf16.msra.mxu3 %v2849_v32  ;;  %v479_v40 = vpack.c.bf16 %v459_v36, %v459_v36  ;;  %v478_v41 = vpack.c.bf16 %v458_v37, %v458_v37  ;;  %v480_v42 = vpack.c.bf16 %v460_v39, %v460_v39  ;;  %v462_v43 = vld [vmem:[%s3315_s20 + $0x68] sm:$0xff]  ;;  %v461_v44 = vld [vmem:[%s3315_s20 + $0x60] sm:$0xff]  ;;  %v464_v47 = vld [vmem:[%s3315_s20 + $0x78] sm:$0xff]  ;;  %v3242_v36 = vmov 0  }
  0x17   : > { %v482_v45 = vpack.c.bf16 %v462_v43, %v462_v43  ;;  %v481_v46 = vpack.c.bf16 %v461_v44, %v461_v44  ;;  %v465_v48 = vld [vmem:[%s3315_s20 + $0x80] sm:$0xff]  ;;  %v484_v49 = vpack.c.bf16 %v464_v47, %v464_v47  ;;  %v3135_v53 = vld [vmem:[%s4210_s2 + $0x44] sm:$0xf0]  ;;  %v2830_v57 = vld [vmem:[%s4210_s2 + $0x48] sm:$0xf0] }
  0x18   : > { %789 = vmatpush.bf16.msra.mxu0 %v2837_v35  ;;  %v485_v50 = vpack.c.bf16 %v465_v48, %v465_v48  ;;  %v388_v51 = vld [vmem:[%s3389_s11] sm:$0xff]  ;;  %v2820_v59 = vld [vmem:[%s4210_s2 + $0x30] sm:$0xf]  ;;  %v3133_v60 = vld [vmem:[%s4210_s2 + $0x34] sm:$0xf0] }
  0x19   : > { %3208 = vmatpush.bf16.msra.mxu2 %v2837_v35  ;;  %v2828_v52 = vld [vmem:[%s4210_s2 + $0x40] sm:$0xf]  ;;  %v408_v54 = vpack.c.bf16 %v388_v51, %v388_v51  ;;  %v3134_v56 = vld [vmem:[%s4210_s2 + $0x44] sm:$0xf]  ;;  %v3132_v61 = vld [vmem:[%s4210_s2 + $0x34] sm:$0xf]  ;;  %v2821_v62 = vor.u32 %v3133_v60, %v2820_v59 }
  0x1a   : > { %848 = vmatpush.bf16.msra.mxu1 %v2841_v38  ;;  %3216 = vmatpush.bf16.msra.mxu3 %v2841_v38  ;;  %v2829_v55 = vor.u32 %v3135_v53, %v2828_v52  ;;  %v2833_v58 = vor.u32 %v3134_v56, %v2830_v57  ;;  %v2822_v63 = vld [vmem:[%s4210_s2 + $0x38] sm:$0xf0]  ;;  %v463_v0 = vld [vmem:[%s3315_s20 + $0x70] sm:$0xff]  ;;  %v389_v3 = vld [vmem:[%s3389_s11 + $0x8] sm:$0xff] }
  0x1b   : > { %511 = vrot.lane.b32.xlu0 %v470_v10, %s3241_s21  ;;  %515 = vrot.lane.b32.xlu1 %v472_v11, %s3241_s21  ;;  %429 = vst.msk [vmem:[#allocation2] sm:$0xf] %vm428_vm0, %v408_v54  ;;  %v2825_v1 = vor.u32 %v3132_v61, %v2822_v63  ;;  %v483_v2 = vpack.c.bf16 %v463_v0, %v463_v0  ;;  %v2812_v4 = vld [vmem:[%s4210_s2 + $0x20] sm:$0xf]  ;;  %v3131_v5 = vld [vmem:[%s4210_s2 + $0x24] sm:$0xf0] }
  0x1c   : > { %519 = vrot.lane.b32.xlu2 %v474_v12, %s3241_s21  ;;  %790 = vmatpush.bf16.msra.mxu0 %v2829_v55  ;;  %v409_v6 = vpack.c.bf16 %v389_v3, %v389_v3  ;;  %v2813_v7 = vor.u32 %v3131_v5, %v2812_v4  ;;  %v3130_v8 = vld [vmem:[%s4210_s2 + $0x24] sm:$0xf]  ;;  %v2814_v9 = vld [vmem:[%s4210_s2 + $0x28] sm:$0xf0]  ;;  %v2804_v11 = vld [vmem:[%s4210_s2 + $0x10] sm:$0xf] }
  0x1d   : > { %3209 = vmatpush.bf16.msra.mxu2 %v2829_v55  ;;  %v2817_v10 = vor.u32 %v3130_v8, %v2814_v9  ;;  %v3129_v12 = vld [vmem:[%s4210_s2 + $0x14] sm:$0xf0]  ;;  %v3128_v13 = vld [vmem:[%s4210_s2 + $0x14] sm:$0xf]  ;;  %v2806_v15 = vld [vmem:[%s4210_s2 + $0x18] sm:$0xf0] }
  0x1e   : > { %849 = vmatpush.bf16.msra.mxu1 %v2833_v58  ;;  %3217 = vmatpush.bf16.msra.mxu3 %v2833_v58  ;;  %430 = vst.msk [vmem:[#allocation2 + $0x4] sm:$0xf] %vm428_vm0, %v409_v6  ;;  %v2805_v14 = vor.u32 %v3129_v12, %v2804_v11  ;;  %v468_v16 = vld [vmem:[%s3315_s20 + $0x98] sm:$0xff]  ;;  %v467_v17 = vld [vmem:[%s3315_s20 + $0x90] sm:$0xff]  ;;  %v2809_v18 = vor.u32 %v3128_v13, %v2806_v15  ;;  %v2796_v22 = vld [vmem:[%s4210_s2] sm:$0xf] }
  0x1f   : > { %v488_v19 = vpack.c.bf16 %v468_v16, %v468_v16  ;;  %v487_v20 = vpack.c.bf16 %v467_v17, %v467_v17  ;;  %v390_v21 = vld [vmem:[%s3389_s11 + $0x10] sm:$0xff]  ;;  %v3127_v23 = vld [vmem:[%s4210_s2 + $0x4] sm:$0xf0]  ;;  %v3126_v26 = vld [vmem:[%s4210_s2 + $0x4] sm:$0xf] }
  0x20   : > { %791 = vmatpush.bf16.msra.mxu0 %v2821_v62  ;;  %v410_v24 = vpack.c.bf16 %v390_v21, %v390_v21  ;;  %v2797_v25 = vor.u32 %v3127_v23, %v2796_v22  ;;  %v466_v29 = vld [vmem:[%s3315_s20 + $0x88] sm:$0xff]  ;;  %v391_v30 = vld [vmem:[%s3389_s11 + $0x18] sm:$0xff]  ;;  %v394_v51 = vld [vmem:[%s3389_s11 + $0x30] sm:$0xff] }
  0x21   : > { %3210 = vmatpush.bf16.msra.mxu2 %v2821_v62  ;;  %v486_v32 = vpack.c.bf16 %v466_v29, %v466_v29  ;;  %v411_v33 = vpack.c.bf16 %v391_v30, %v391_v30  ;;  %v393_v39 = vld [vmem:[%s3389_s11 + $0x28] sm:$0xff]  ;;  %v395_v47 = vld [vmem:[%s3389_s11 + $0x38] sm:$0xff]  ;;  %v414_v52 = vpack.c.bf16 %v394_v51, %v394_v51  ;;  %v398_v56 = vld [vmem:[%s3389_s11 + $0x50] sm:$0xff] }
  0x22   : > { %850 = vmatpush.bf16.msra.mxu1 %v2825_v1  ;;  %3218 = vmatpush.bf16.msra.mxu3 %v2825_v1  ;;  %431 = vst.msk [vmem:[#allocation2 + $0x8] sm:$0xf] %vm428_vm0, %v410_v24  ;;  %v399_v53 = vld [vmem:[%s3389_s11 + $0x58] sm:$0xff]  ;;  %v418_v58 = vpack.c.bf16 %v398_v56, %v398_v56  ;;  %v397_v62 = vld [vmem:[%s3389_s11 + $0x48] sm:$0xff]  ;;  %v2916_v8 = vld [vmem:[%s4212_s4 + $0x70] sm:$0xf] }
  0x23   : > { %523 = vrot.lane.b32.xlu1 %v476_v27, %s3241_s21  ;;  %521 = vrot.lane.b32.xlu0 %v475_v28, %s3241_s21  ;;  %v2798_v27 = vld [vmem:[%s4210_s2 + $0x8] sm:$0xf0]  ;;  %432 = vst.msk [vmem:[#allocation2 + $0xc] sm:$0xf] %vm428_vm0, %v411_v33  ;;  %v419_v55 = vpack.c.bf16 %v399_v53, %v399_v53  ;;  %v417_v0 = vpack.c.bf16 %v397_v62, %v397_v62  ;;  %v3157_v9 = vld [vmem:[%s4212_s4 + $0x74] sm:$0xf0] }
  0x24   : > { %525 = vrot.lane.b32.xlu2 %v477_v31, %s3241_s21  ;;  %792 = vmatpush.bf16.msra.mxu0 %v2813_v7  ;;  %v2801_v28 = vor.u32 %v3126_v26, %v2798_v27  ;;  %v392_v31 = vld [vmem:[%s3389_s11 + $0x20] sm:$0xff]  ;;  %435 = vst.msk [vmem:[#allocation2 + $0x18] sm:$0xf] %vm428_vm0, %v414_v52  ;;  %v401_v63 = vld [vmem:[%s3389_s11 + $0x68] sm:$0xff]  ;;  %v2917_v11 = vor.u32 %v3157_v9, %v2916_v8  ;;  %v3173_v12 = vld [vmem:[%s4212_s4 + $0xf4] sm:$0xf0] }
  0x25   : > { %3211 = vmatpush.bf16.msra.mxu2 %v2813_v7  ;;  %v412_v34 = vpack.c.bf16 %v392_v31, %v392_v31  ;;  %440 = vst.msk [vmem:[#allocation2 + $0x2c] sm:$0xf] %vm428_vm0, %v419_v55  ;;  %v421_v1 = vpack.c.bf16 %v401_v63, %v401_v63  ;;  %v3156_v13 = vld [vmem:[%s4212_s4 + $0x74] sm:$0xf]  ;;  %v3155_v21 = vld [vmem:[%s4212_s4 + $0x64] sm:$0xf0] }
  0x26   : > { %851 = vmatpush.bf16.msra.mxu1 %v2817_v10  ;;  %3219 = vmatpush.bf16.msra.mxu3 %v2817_v10  ;;  %439 = vst.msk [vmem:[#allocation2 + $0x28] sm:$0xf] %vm428_vm0, %v418_v58  ;;  %v2980_v10 = vld [vmem:[%s4212_s4 + $0xf0] sm:$0xf]  ;;  %v3172_v17 = vld [vmem:[%s4212_s4 + $0xf4] sm:$0xf] }
  0x27   : > { %433 = vst.msk [vmem:[#allocation2 + $0x10] sm:$0xf] %vm428_vm0, %v412_v34  ;;  %v2981_v15 = vor.u32 %v3173_v12, %v2980_v10  ;;  %v2972_v22 = vld [vmem:[%s4212_s4 + $0xe0] sm:$0xf]  ;;  %v402_v26 = vld [vmem:[%s3389_s11 + $0x70] sm:$0xff]  ;;  %v403_v27 = vld [vmem:[%s3389_s11 + $0x78] sm:$0xff] }
  0x28   : > { %793 = vmatpush.bf16.msra.mxu0 %v2805_v14  ;;  %438 = vst.msk [vmem:[#allocation2 + $0x24] sm:$0xf] %vm428_vm0, %v417_v0  ;;  %v422_v29 = vpack.c.bf16 %v402_v26, %v402_v26  ;;  %v423_v30 = vpack.c.bf16 %v403_v27, %v403_v27  ;;  %v3154_v31 = vld [vmem:[%s4212_s4 + $0x64] sm:$0xf]  ;;  %v405_v52 = vld [vmem:[%s3389_s11 + $0x88] sm:$0xff]  ;;  %v406_v12 = vld [vmem:[%s3389_s11 + $0x90] sm:$0xff] }
  0x29   : > { %3212 = vmatpush.bf16.msra.mxu2 %v2805_v14  ;;  %442 = vst.msk [vmem:[#allocation2 + $0x34] sm:$0xf] %vm428_vm0, %v421_v1  ;;  %v2918_v14 = vld [vmem:[%s4212_s4 + $0x78] sm:$0xf0]  ;;  %v3170_v33 = vld [vmem:[%s4212_s4 + $0xe4] sm:$0xf]  ;;  %v425_v55 = vpack.c.bf16 %v405_v52, %v405_v52 }
  0x2a   : > { %852 = vmatpush.bf16.msra.mxu1 %v2809_v18  ;;  %3220 = vmatpush.bf16.msra.mxu3 %v2809_v18  ;;  %v2921_v16 = vor.u32 %v3156_v13, %v2918_v14  ;;  %v2982_v18 = vld [vmem:[%s4212_s4 + $0xf8] sm:$0xf0]  ;;  %443 = vst.msk [vmem:[#allocation2 + $0x38] sm:$0xf] %vm428_vm0, %v422_v29  ;;  %v404_v53 = vld [vmem:[%s3389_s11 + $0x80] sm:$0xff]  ;;  %v426_v14 = vpack.c.bf16 %v406_v12, %v406_v12 }
  0x2b   : > { %529 = vrot.lane.b32.xlu1 %v479_v40, %s3241_s21  ;;  %527 = vrot.lane.b32.xlu0 %v478_v41, %s3241_s21  ;;  %v413_v41 = vpack.c.bf16 %v393_v39, %v393_v39  ;;  %v3153_v39 = vld [vmem:[%s4212_s4 + $0x54] sm:$0xf0]  ;;  %444 = vst.msk [vmem:[#allocation2 + $0x3c] sm:$0xf] %vm428_vm0, %v423_v30  ;;  %v3151_v56 = vld [vmem:[%s4212_s4 + $0x44] sm:$0xf0] }
  0x2c   : > { %531 = vrot.lane.b32.xlu2 %v480_v42, %s3241_s21  ;;  %794 = vmatpush.bf16.msra.mxu0 %v2797_v25  ;;  %v3167_v58 = vld [vmem:[%s4212_s4 + $0xc4] sm:$0xf0]  ;;  %v3150_v62 = vld [vmem:[%s4212_s4 + $0x44] sm:$0xf]  ;;  %v2894_v63 = vld [vmem:[%s4212_s4 + $0x48] sm:$0xf0] }
  0x2d   : > { %3213 = vmatpush.bf16.msra.mxu2 %v2797_v25  ;;  %434 = vst.msk [vmem:[#allocation2 + $0x14] sm:$0xf] %vm428_vm0, %v413_v41  ;;  %v3171_v25 = vld [vmem:[%s4212_s4 + $0xe4] sm:$0xf0]  ;;  %v3166_v0 = vld [vmem:[%s4212_s4 + $0xc4] sm:$0xf] }
  0x2e   : > { %853 = vmatpush.bf16.msra.mxu1 %v2801_v28  ;;  %3221 = vmatpush.bf16.msra.mxu3 %v2801_v28  ;;  %v2973_v28 = vor.u32 %v3171_v25, %v2972_v22  ;;  %v2948_v8 = vld [vmem:[%s4212_s4 + $0xb0] sm:$0xf]  ;;  %446 = vst.msk [vmem:[#allocation2 + $0x44] sm:$0xf] %vm428_vm0, %v425_v55  ;;  %v3165_v10 = vld [vmem:[%s4212_s4 + $0xb4] sm:$0xf0] }
  0x2f   : > { %v2876_v22 = vld [vmem:[%s4212_s4 + $0x20] sm:$0xf]  ;;  %v3163_v26 = vld [vmem:[%s4212_s4 + $0xa4] sm:$0xf0]  ;;  %447 = vst.msk [vmem:[#allocation2 + $0x48] sm:$0xf] %vm428_vm0, %v426_v14 }
  0x30   : > { %1457 = vmatpush.bf16.msrb.mxu0 %v2921_v16  ;;  %v2886_v16 = vld [vmem:[%s4212_s4 + $0x38] sm:$0xf0]  ;;  %v2940_v25 = vld [vmem:[%s4212_s4 + $0xa0] sm:$0xf]  ;;  %v3146_v29 = vld [vmem:[%s4212_s4 + $0x24] sm:$0xf] }
  0x31   : > { %1339 = vmatpush.bf16.msrb.mxu2 %v2917_v11  ;;  %v407_v11 = vld [vmem:[%s3389_s11 + $0x98] sm:$0xff]  ;;  %v2941_v27 = vor.u32 %v3163_v26, %v2940_v25  ;;  %v2878_v30 = vld [vmem:[%s4212_s4 + $0x28] sm:$0xf0]  ;;  %v3143_v55 = vld [vmem:[%s4212_s4 + $0x4] sm:$0xf0] }
  0x32   : > { %1398 = vmatpush.bf16.msrb.mxu3 %v2981_v15  ;;  %v427_v13 = vpack.c.bf16 %v407_v11, %v407_v11  ;;  %v3148_v15 = vld [vmem:[%s4212_s4 + $0x34] sm:$0xf] }
  0x33   : > { %535 = vrot.lane.b32.xlu1 %v482_v45, %s3241_s21  ;;  %533 = vrot.lane.b32.xlu0 %v481_v46, %s3241_s21  ;;  %v396_v46 = vld [vmem:[%s3389_s11 + $0x40] sm:$0xff] }
  0x34   : > { %537 = vrot.lane.b32.xlu2 %v483_v2, %s3241_s21  ;;  %v416_v48 = vpack.c.bf16 %v396_v46, %v396_v46  ;;  %v400_v2 = vld [vmem:[%s3389_s11 + $0x60] sm:$0xff]  ;;  %v2902_v46 = vld [vmem:[%s4212_s4 + $0x58] sm:$0xf0]  ;;  %448 = vst.msk [vmem:[#allocation2 + $0x4c] sm:$0xf] %vm428_vm0, %v427_v13  ;;  %s4125_s11 = scalar_lea.vmem %s4218_s10, %s3309_s9 }
  0x35   : > { %v420_v4 = vpack.c.bf16 %v400_v2, %v400_v2  ;;  %v2897_v2 = vor.u32 %v3150_v62, %v2894_v63 }
  0x36   : > { %437 = vst.msk [vmem:[#allocation2 + $0x20] sm:$0xf] %vm428_vm0, %v416_v48  ;;  %1399 = vmatpush.bf16.msrb.mxu3 %v2973_v28  ;;  %v3168_v48 = vld [vmem:[%s4212_s4 + $0xd4] sm:$0xf] }
  0x37   : > { %441 = vst.msk [vmem:[#allocation2 + $0x30] sm:$0xf] %vm428_vm0, %v420_v4  ;;  %v2884_v4 = vld [vmem:[%s4212_s4 + $0x30] sm:$0xf] }
  0x3b   : > { %539 = vrot.lane.b32.xlu0 %v484_v49, %s3241_s21  ;;  %541 = vrot.lane.b32.xlu1 %v485_v50, %s3241_s21  ;;  %v415_v50 = vpack.c.bf16 %v395_v47, %v395_v47 }
  0x3c   : > { %543 = vrot.lane.b32.xlu2 %v486_v32, %s3241_s21  ;;  %v2910_v32 = vld [vmem:[%s4212_s4 + $0x68] sm:$0xf0] }
  0x3d   : > { %436 = vst.msk [vmem:[#allocation2 + $0x1c] sm:$0xf] %vm428_vm0, %v415_v50 }
  0x43   : > { %547 = vrot.lane.b32.xlu1 %v488_v19, %s3241_s21  ;;  %545 = vrot.lane.b32.xlu0 %v487_v20, %s3241_s21  ;;  %v2985_v19 = vor.u32 %v3172_v17, %v2982_v18  ;;  %v2908_v20 = vld [vmem:[%s4212_s4 + $0x60] sm:$0xf]  ;;  %v2949_v17 = vor.u32 %v3165_v10, %v2948_v8  ;;  %v2889_v18 = vor.u32 %v3148_v15, %v2886_v16  ;;  %v3188_v15 = vld [vmem:[%s4214_s6 + $0x74] sm:$0xf] }
  0x44   : > { %v2909_v24 = vor.u32 %v3155_v21, %v2908_v20  ;;  %v2950_v20 = vld [vmem:[%s4212_s4 + $0xb8] sm:$0xf0] }
  0x45   : > { %1516 = vmatpush.bf16.msrb.mxu1 %v2985_v19  ;;  %v3164_v19 = vld [vmem:[%s4212_s4 + $0xb4] sm:$0xf]  ;;  %v3046_v16 = vld [vmem:[%s4214_s6 + $0x78] sm:$0xf0] }
  0x46   : > { %1340 = vmatpush.bf16.msrb.mxu2 %v2909_v24  ;;  %v2953_v21 = vor.u32 %v3164_v19, %v2950_v20  ;;  %v3110_v19 = vld [vmem:[%s4214_s6 + $0xf8] sm:$0xf0] }
  0x6e   : > { %v518_v35 = vpop.permute.xlu2 %517 }
  0x6f   : > { %574 = vst.msk [vmem:[#allocation2 + $0x10] sm:$0xf] %vm569_vm1, %v518_v35  ;;  %v2913_v35 = vor.u32 %v3154_v31, %v2910_v32  ;;  %v3162_v31 = vld [vmem:[%s4212_s4 + $0xa4] sm:$0xf]  ;;  %v2881_v32 = vor.u32 %v3146_v29, %v2878_v30  ;;  %v3187_v29 = vld [vmem:[%s4214_s6 + $0x64] sm:$0xf0] }
  0x70   : > { %595 = vst.msk [vmem:[#allocation2 + $0x10] sm:$0xf] %vm590_vm2, %v3242_v36  ;;  %v3100_v30 = vld [vmem:[%s4214_s6 + $0xe0] sm:$0xf] }
  0x71   : > { %1458 = vmatpush.bf16.msrb.mxu0 %v2913_v35  ;;  %v3145_v35 = vld [vmem:[%s4212_s4 + $0x14] sm:$0xf0] }
  0x76   : > { %v520_v40 = vpop.permute.xlu2 %519 }
  0x77   : > { %575 = vst.msk [vmem:[#allocation2 + $0x14] sm:$0xf] %vm569_vm1, %v520_v40 }
  0x78   : > { %596 = vst.msk [vmem:[#allocation2 + $0x14] sm:$0xf] %vm590_vm2, %v3242_v36 }
  0x7e   : > { %v526_v45 = vpop.permute.xlu2 %525 }
  0x7f   : > { %578 = vst.msk [vmem:[#allocation2 + $0x20] sm:$0xf] %vm569_vm1, %v526_v45  ;;  %v3118_v7 = vld [vmem:[#allocation2 + $0x10] sm:$0xff] }
  0x80   : > { %599 = vst.msk [vmem:[#allocation2 + $0x20] sm:$0xf] %vm590_vm2, %v3242_v36  ;;  %v3152_v45 = vld [vmem:[%s4212_s4 + $0x54] sm:$0xf] }
  0x81   : > { %v2905_v47 = vor.u32 %v3152_v45, %v2902_v46 }
  0x83   : > { %1459 = vmatpush.bf16.msrb.mxu0 %v2905_v47 }
  0x85   : > { %v510_v37 = vpop.permute.xlu0 %509  ;;  %v514_v38 = vpop.permute.xlu1 %513 }
  0x86   : > { %570 = vst.msk [vmem:[#allocation2] sm:$0xf] %vm569_vm1, %v510_v37  ;;  %v532_v57 = vpop.permute.xlu2 %531  ;;  %v2974_v37 = vld [vmem:[%s4212_s4 + $0xe8] sm:$0xf0] }
  0x87   : > { %591 = vst.msk [vmem:[#allocation2] sm:$0xf] %vm590_vm2, %v3242_v36  ;;  %v2977_v40 = vor.u32 %v3170_v33, %v2974_v37  ;;  %1460 = vmatpush.bf16.msrb.mxu0 %v2897_v2  ;;  %v2942_v33 = vld [vmem:[%s4212_s4 + $0xa8] sm:$0xf0] }
  0x88   : > { %572 = vst.msk [vmem:[#allocation2 + $0x8] sm:$0xf] %vm569_vm1, %v514_v38  ;;  %v2900_v38 = vld [vmem:[%s4212_s4 + $0x50] sm:$0xf]  ;;  %v2926_v2 = vld [vmem:[%s4212_s4 + $0x88] sm:$0xf0] }
  0x89   : > { %593 = vst.msk [vmem:[#allocation2 + $0x8] sm:$0xf] %vm590_vm2, %v3242_v36  ;;  %v2901_v41 = vor.u32 %v3153_v39, %v2900_v38  ;;  %1517 = vmatpush.bf16.msrb.mxu1 %v2977_v40  ;;  %v2945_v38 = vor.u32 %v3162_v31, %v2942_v33  ;;  %v2932_v40 = vld [vmem:[%s4212_s4 + $0x90] sm:$0xf] }
  0x8a   : > { %581 = vst.msk [vmem:[#allocation2 + $0x2c] sm:$0xf] %vm569_vm1, %v532_v57  ;;  %v2956_v57 = vld [vmem:[%s4212_s4 + $0xc0] sm:$0xf] }
  0x8b   : > { %602 = vst.msk [vmem:[#allocation2 + $0x2c] sm:$0xf] %vm590_vm2, %v3242_v36  ;;  %1341 = vmatpush.bf16.msrb.mxu2 %v2901_v41  ;;  %v2957_v1 = vor.u32 %v3167_v58, %v2956_v57  ;;  %1461 = vmatpush.bf16.msrb.mxu0 %v2889_v18  ;;  %v3161_v41 = vld [vmem:[%s4212_s4 + $0x94] sm:$0xf0]  ;;  %v3159_v58 = vld [vmem:[%s4212_s4 + $0x84] sm:$0xf0]  ;;  %v3049_v18 = vor.u32 %v3188_v15, %v3046_v16 }
  0x8d   : > { %v512_v42 = vpop.permute.xlu0 %511  ;;  %v516_v43 = vpop.permute.xlu1 %515 }
  0x8e   : > { %571 = vst.msk [vmem:[#allocation2 + $0x4] sm:$0xf] %vm569_vm1, %v512_v42  ;;  %v2964_v42 = vld [vmem:[%s4212_s4 + $0xd0] sm:$0xf] }
  0x8f   : > { %592 = vst.msk [vmem:[#allocation2 + $0x4] sm:$0xf] %vm590_vm2, %v3242_v36  ;;  %1462 = vmatpush.bf16.msrb.mxu0 %v2881_v32  ;;  %v3203_v32 = vld [vmem:[%s4214_s6 + $0xe4] sm:$0xf0] }
  0x90   : > { %573 = vst.msk [vmem:[#allocation2 + $0xc] sm:$0xf] %vm569_vm1, %v516_v43  ;;  %v3169_v43 = vld [vmem:[%s4212_s4 + $0xd4] sm:$0xf0]  ;;  %v3101_v33 = vor.u32 %v3203_v32, %v3100_v30 }
  0x91   : > { %594 = vst.msk [vmem:[#allocation2 + $0xc] sm:$0xf] %vm590_vm2, %v3242_v36 }
  0x95   : > { %v524_v49 = vpop.permute.xlu1 %523  ;;  %v522_v54 = vpop.permute.xlu0 %521 }
  0x96   : > { %v3116_v44 = vld [vmem:[#allocation2] sm:$0xff]  ;;  %577 = vst.msk [vmem:[#allocation2 + $0x1c] sm:$0xf] %vm569_vm1, %v524_v49  ;;  %v2966_v49 = vld [vmem:[%s4212_s4 + $0xd8] sm:$0xf0] }
  0x97   : > { %795 = vmatmul.bf16.vlgmr.msra.gmra.mxu0 %v3116_v44  ;;  %854 = vmatmul.bf16.vlgmr.msra.gmra.mxu1 %v3116_v44  ;;  %598 = vst.msk [vmem:[#allocation2 + $0x1c] sm:$0xf] %vm590_vm2, %v3242_v36  ;;  %v2965_v44 = vor.u32 %v3169_v43, %v2964_v42  ;;  %v2969_v51 = vor.u32 %v3168_v48, %v2966_v49  ;;  %v3144_v48 = vld [vmem:[%s4212_s4 + $0x14] sm:$0xf]  ;;  %v2870_v49 = vld [vmem:[%s4212_s4 + $0x18] sm:$0xf0] }
  0x98   : > { %576 = vst.msk [vmem:[#allocation2 + $0x18] sm:$0xf] %vm569_vm1, %v522_v54  ;;  %v3117_v59 = vld [vmem:[#allocation2 + $0x8] sm:$0xff]  ;;  %v2892_v54 = vld [vmem:[%s4212_s4 + $0x40] sm:$0xf]  ;;  %v2933_v43 = vor.u32 %v3161_v41, %v2932_v40 }
  0x99   : > { %597 = vst.msk [vmem:[#allocation2 + $0x18] sm:$0xf] %vm590_vm2, %v3242_v36  ;;  %1400 = vmatpush.bf16.msrb.mxu3 %v2965_v44  ;;  %1518 = vmatpush.bf16.msrb.mxu1 %v2969_v51  ;;  %v2873_v51 = vor.u32 %v3144_v48, %v2870_v49  ;;  %v3202_v48 = vld [vmem:[%s4214_s6 + $0xe4] sm:$0xf] }
  0x9b   : > { %1463 = vmatpush.bf16.msrb.mxu0 %v2873_v51 }
  0x9d   : > { %v530_v60 = vpop.permute.xlu1 %529  ;;  %v528_v61 = vpop.permute.xlu0 %527  ;;  %1401 = vmatpush.bf16.msrb.mxu3 %v2957_v1  ;;  %v3158_v1 = vld [vmem:[%s4212_s4 + $0x84] sm:$0xf] }
  0x9e   : > { %580 = vst.msk [vmem:[#allocation2 + $0x28] sm:$0xf] %vm569_vm1, %v530_v60  ;;  %v424_v60 = vpack.c.bf16 %v404_v53, %v404_v53  ;;  %v925_v53 = vld [vmem:[%s4211_s3] sm:$0x3] }
  0x9f   : > { %601 = vst.msk [vmem:[#allocation2 + $0x28] sm:$0xf] %vm590_vm2, %v3242_v36  ;;  %v928_v62 = vperm.slane %v925_v53, 1 }
  0xa0   : > { %579 = vst.msk [vmem:[#allocation2 + $0x24] sm:$0xf] %vm569_vm1, %v528_v61  ;;  %v3119_v50 = vld [vmem:[#allocation2 + $0x18] sm:$0xff]  ;;  %v2893_v61 = vor.u32 %v3151_v56, %v2892_v54  ;;  %v2860_v54 = vld [vmem:[%s4212_s4] sm:$0xf] }
  0xa1   : > { %600 = vst.msk [vmem:[#allocation2 + $0x24] sm:$0xf] %vm590_vm2, %v3242_v36  ;;  %1402 = vmatpush.bf16.msrb.mxu3 %v2949_v17  ;;  %v2924_v56 = vld [vmem:[%s4212_s4 + $0x80] sm:$0xf]  ;;  %v2861_v57 = vor.u32 %v3143_v55, %v2860_v54  ;;  %v3204_v17 = vld [vmem:[%s4214_s6 + $0xf4] sm:$0xf] }
  0xa2   : > { %1342 = vmatpush.bf16.msrb.mxu2 %v2893_v61  ;;  %445 = vst.msk [vmem:[#allocation2 + $0x40] sm:$0xf] %vm428_vm0, %v424_v60  ;;  %v2862_v60 = vld [vmem:[%s4212_s4 + $0x8] sm:$0xf0]  ;;  %v927_v61 = vperm.slane %v925_v53, 0  ;;  %v2925_v63 = vor.u32 %v3159_v58, %v2924_v56  ;;  %v3113_v20 = vor.u32 %v3204_v17, %v3110_v19 }
  0xa5   : > { %v536_v3 = vpop.permute.xlu1 %535  ;;  %v534_v6 = vpop.permute.xlu0 %533  ;;  %1403 = vmatpush.bf16.msrb.mxu3 %v2941_v27 }
  0xa6   : > { %583 = vst.msk [vmem:[#allocation2 + $0x34] sm:$0xf] %vm569_vm1, %v536_v3  ;;  %v3121_v5 = vld [vmem:[#allocation2 + $0x28] sm:$0xff] }
  0xa7   : > { %800 = vmatmul.bf16.gmra.mxu0 %v3117_v59  ;;  %859 = vmatmul.bf16.gmra.mxu1 %v3117_v59  ;;  %604 = vst.msk [vmem:[#allocation2 + $0x34] sm:$0xf] %vm590_vm2, %v3242_v36  ;;  %v538_v59 = vpop.permute.xlu2 %537  ;;  %v2958_v3 = vld [vmem:[%s4212_s4 + $0xc8] sm:$0xf0] }
  0xa8   : > { %820 = vmatmul.bf16.vlgmr.msra.gmra.mxu2 %v3121_v5  ;;  %879 = vmatmul.bf16.vlgmr.msra.gmra.mxu3 %v3121_v5  ;;  %582 = vst.msk [vmem:[#allocation2 + $0x30] sm:$0xf] %vm569_vm1, %v534_v6  ;;  %v2961_v6 = vor.u32 %v3166_v0, %v2958_v3  ;;  %v3120_v37 = vld [vmem:[#allocation2 + $0x20] sm:$0xff]  ;;  %v2929_v3 = vor.u32 %v3158_v1, %v2926_v2 }
  0xa9   : > { %603 = vst.msk [vmem:[#allocation2 + $0x30] sm:$0xf] %vm590_vm2, %v3242_v36  ;;  %1404 = vmatpush.bf16.msrb.mxu3 %v2933_v43 }
  0xaa   : > { %584 = vst.msk [vmem:[#allocation2 + $0x38] sm:$0xf] %vm569_vm1, %v538_v59  ;;  %1519 = vmatpush.bf16.msrb.mxu1 %v2961_v6  ;;  %v3142_v59 = vld [vmem:[%s4212_s4 + $0x4] sm:$0xf]  ;;  %v3189_v6 = vld [vmem:[%s4214_s6 + $0x74] sm:$0xf0] }
  0xab   : > { %605 = vst.msk [vmem:[#allocation2 + $0x38] sm:$0xf] %vm590_vm2, %v3242_v36  ;;  %v2865_v0 = vor.u32 %v3142_v59, %v2862_v60 }
  0xad   : > { %v540_v34 = vpop.permute.xlu0 %539  ;;  %v542_v5 = vpop.permute.xlu1 %541  ;;  %1405 = vmatpush.bf16.msrb.mxu3 %v2925_v63  ;;  %1464 = vmatpush.bf16.msrb.mxu0 %v2865_v0 }
  0xae   : > { %585 = vst.msk [vmem:[#allocation2 + $0x3c] sm:$0xf] %vm569_vm1, %v540_v34  ;;  %1520 = vmatpush.bf16.msrb.mxu1 %v2953_v21  ;;  %v2868_v34 = vld [vmem:[%s4212_s4 + $0x10] sm:$0xf] }
  0xaf   : > { %606 = vst.msk [vmem:[#allocation2 + $0x3c] sm:$0xf] %vm590_vm2, %v3242_v36  ;;  %v2869_v39 = vor.u32 %v3145_v35, %v2868_v34  ;;  %v544_v42 = vpop.permute.xlu2 %543 }
  0xb0   : > { %v3122_v23 = vld [vmem:[#allocation2 + $0x30] sm:$0xff]  ;;  %586 = vst.msk [vmem:[#allocation2 + $0x40] sm:$0xf] %vm569_vm1, %v542_v5 }
  0xb1   : > { %607 = vst.msk [vmem:[#allocation2 + $0x40] sm:$0xf] %vm590_vm2, %v3242_v36  ;;  %v3044_v5 = vld [vmem:[%s4214_s6 + $0x70] sm:$0xf]  ;;  %2127 = vmatpush.bf16.msra.mxu0 %v3049_v18 }
  0xb2   : > { %587 = vst.msk [vmem:[#allocation2 + $0x44] sm:$0xf] %vm569_vm1, %v544_v42  ;;  %1521 = vmatpush.bf16.msrb.mxu1 %v2945_v38  ;;  %v3045_v8 = vor.u32 %v3189_v6, %v3044_v5 }
  0xb3   : > { %608 = vst.msk [vmem:[#allocation2 + $0x44] sm:$0xf] %vm590_vm2, %v3242_v36 }
  0xb5   : > { %v548_v45 = vpop.permute.xlu1 %547  ;;  %v546_v46 = vpop.permute.xlu0 %545 }
  0xb6   : > { %v3123_v28 = vld [vmem:[#allocation2 + $0x38] sm:$0xff]  ;;  %589 = vst.msk [vmem:[#allocation2 + $0x4c] sm:$0xf] %vm569_vm1, %v548_v45 }
  0xb7   : > { %805 = vmatmul.bf16.gmra.mxu0 %v3118_v7  ;;  %864 = vmatmul.bf16.gmra.mxu1 %v3118_v7  ;;  %v3149_v7 = vld [vmem:[%s4212_s4 + $0x34] sm:$0xf0]  ;;  %610 = vst.msk [vmem:[#allocation2 + $0x4c] sm:$0xf] %vm590_vm2, %v3242_v36 }
  0xb8   : > { %825 = vmatmul.bf16.gmra.mxu2 %v3122_v23  ;;  %884 = vmatmul.bf16.gmra.mxu3 %v3122_v23  ;;  %v2885_v9 = vor.u32 %v3149_v7, %v2884_v4  ;;  %v3147_v23 = vld [vmem:[%s4212_s4 + $0x24] sm:$0xf0]  ;;  %588 = vst.msk [vmem:[#allocation2 + $0x48] sm:$0xf] %vm569_vm1, %v546_v46  ;;  %v931_v4 = vpack.c.bf16 %v928_v62, %v927_v61  ;;  %v3108_v7 = vld [vmem:[%s4214_s6 + $0xf0] sm:$0xf] }
  0xb9   : > { %v2877_v24 = vor.u32 %v3147_v23, %v2876_v22  ;;  %609 = vst.msk [vmem:[#allocation2 + $0x48] sm:$0xf] %vm590_vm2, %v3242_v36  ;;  %v2934_v36 = vld [vmem:[%s4212_s4 + $0x98] sm:$0xf0]  ;;  %v3186_v46 = vld [vmem:[%s4214_s6 + $0x64] sm:$0xf] }
  0xba   : > { %1343 = vmatpush.bf16.msrb.mxu2 %v2885_v9  ;;  %v3124_v44 = vld [vmem:[#allocation2 + $0x40] sm:$0xff]  ;;  %v3205_v9 = vld [vmem:[%s4214_s6 + $0xf4] sm:$0xf0]  ;;  %v933_v11 = vunpack.c.l.b16 %v931_v4  ;;  %v934_v12 = vunpack.c.h.b16 %v931_v4 }
  0xbb   : > { %v3109_v10 = vor.u32 %v3205_v9, %v3108_v7  ;;  %v3028_v7 = vld [vmem:[%s4214_s6 + $0x50] sm:$0xf] }
  0xbc   : > { %v935_v13 = vpack.c.b16 %v933_v11, %v933_v11  ;;  %v936_v14 = vpack.c.b16 %v934_v12, %v934_v12  ;;  %v3092_v9 = vld [vmem:[%s4214_s6 + $0xd0] sm:$0xf]  ;;  %v3201_v11 = vld [vmem:[%s4214_s6 + $0xd4] sm:$0xf0] }
  0xbd   : > { %2068 = vmatpush.bf16.msra.mxu3 %v3109_v10 }
  0xbe   : > { %1344 = vmatpush.bf16.msrb.mxu2 %v2877_v24  ;;  %v938_v21 = vpack.i.b16 %v935_v13, %v935_v13  ;;  %v942_v22 = vpack.i.b16 %v936_v14, %v936_v14  ;;  %v3093_v14 = vor.u32 %v3201_v11, %v3092_v9 }
  0xc0   : > { %v3125_v47 = vld [vmem:[#allocation2 + $0x48] sm:$0xff]  ;;  %v940_v26 = vperm.slane %v938_v21, 0  ;;  %v944_v27 = vperm.slane %v942_v22, 0 }
  0xc1   : > { %2069 = vmatpush.bf16.msra.mxu3 %v3101_v33 }
  0xc2   : > { %1345 = vmatpush.bf16.msrb.mxu2 %v2869_v39  ;;  %v3792_v38 = vunpack.c.l.bf16 %v944_v27 }
  0xc5   : > { %2070 = vmatpush.bf16.msra.mxu3 %v3093_v14 }
  0xc6   : > { %1346 = vmatpush.bf16.msrb.mxu2 %v2861_v57 }
  0xc7   : > { %810 = vmatmul.bf16.gmra.mxu0 %v3119_v50  ;;  %869 = vmatmul.bf16.gmra.mxu1 %v3119_v50  ;;  %v3160_v50 = vld [vmem:[%s4212_s4 + $0x94] sm:$0xf] }
  0xc8   : > { %830 = vmatmul.bf16.gmra.mxu2 %v3123_v28  ;;  %889 = vmatmul.bf16.gmra.mxu3 %v3123_v28  ;;  %v2937_v52 = vor.u32 %v3160_v50, %v2934_v36  ;;  %v3036_v28 = vld [vmem:[%s4214_s6 + $0x60] sm:$0xf]  ;;  %v3102_v50 = vld [vmem:[%s4214_s6 + $0xe8] sm:$0xf0] }
  0xc9   : > { %v3037_v31 = vor.u32 %v3187_v29, %v3036_v28  ;;  %v3094_v28 = vld [vmem:[%s4214_s6 + $0xd8] sm:$0xf0] }
  0xca   : > { %1522 = vmatpush.bf16.msrb.mxu1 %v2937_v52  ;;  %2009 = vmatpush.bf16.msra.mxu2 %v3045_v8  ;;  %v3105_v52 = vor.u32 %v3202_v48, %v3102_v50  ;;  %v3185_v8 = vld [vmem:[%s4214_s6 + $0x54] sm:$0xf0] }
  0xcb   : > { %v3029_v10 = vor.u32 %v3185_v8, %v3028_v7 }
  0xce   : > { %1523 = vmatpush.bf16.msrb.mxu1 %v2929_v3  ;;  %2010 = vmatpush.bf16.msra.mxu2 %v3037_v31 }
  0xd2   : > { %2186 = vmatpush.bf16.msra.mxu1 %v3113_v20  ;;  %2011 = vmatpush.bf16.msra.mxu2 %v3029_v10 }
  0xd6   : > { %2187 = vmatpush.bf16.msra.mxu1 %v3105_v52 }
  0xd7   : > { %815 = vmatmul.bf16.gmra.mxu0 %v3120_v37  ;;  %874 = vmatmul.bf16.gmra.mxu1 %v3120_v37  ;;  %v3790_v37 = vunpack.c.l.bf16 %v940_v26  ;;  %v3200_v26 = vld [vmem:[%s4214_s6 + $0xd4] sm:$0xf] }
  0xd8   : > { %835 = vmatmul.bf16.gmra.mxu2 %v3124_v44  ;;  %894 = vmatmul.bf16.gmra.mxu3 %v3124_v44  ;;  %v3097_v29 = vor.u32 %v3200_v26, %v3094_v28  ;;  %v3076_v26 = vld [vmem:[%s4214_s6 + $0xb0] sm:$0xf]  ;;  %v3197_v28 = vld [vmem:[%s4214_s6 + $0xb4] sm:$0xf0] }
  0xda   : > { %2188 = vmatpush.bf16.msra.mxu1 %v3097_v29  ;;  %v3180_v29 = vld [vmem:[%s4214_s6 + $0x34] sm:$0xf] }
  0xe8   : > { %840 = vmatmul.bf16.gmra.mxu2 %v3125_v47  ;;  %899 = vmatmul.bf16.gmra.mxu3 %v3125_v47  ;;  %v3038_v47 = vld [vmem:[%s4214_s6 + $0x68] sm:$0xf0] }
  0xe9   : > { %v3041_v49 = vor.u32 %v3186_v46, %v3038_v47  ;;  %v3199_v46 = vld [vmem:[%s4214_s6 + $0xc4] sm:$0xf0] }
  0xeb   : > { %2128 = vmatpush.bf16.msra.mxu0 %v3041_v49 }
 0x114   : > { %v796_v23 = vpop.f32.mrf.mxu0  ;;  %v855_v24 = vpop.f32.mrf.mxu1 }
 0x115   : > { %v905_v25 = vpack.c.bf16 %v855_v24, %v796_v23  ;;  %v3184_v24 = vld [vmem:[%s4214_s6 + $0x54] sm:$0xf] }
 0x117   : > { %v945_v34 = vunpack.c.l.bf16 %v905_v25  ;;  %v946_v35 = vunpack.c.h.bf16 %v905_v25  ;;  %v3030_v25 = vld [vmem:[%s4214_s6 + $0x58] sm:$0xf0] }
 0x118   : > { %v3033_v27 = vor.u32 %v3184_v24, %v3030_v25  ;;  %v3012_v24 = vld [vmem:[%s4214_s6 + $0x30] sm:$0xf]  ;;  %v3181_v25 = vld [vmem:[%s4214_s6 + $0x34] sm:$0xf0] }
 0x119   : > { %v987_v42 = vadd.f32 %v3790_v37, %v945_v34  ;;  %v988_v43 = vadd.f32 %v3792_v38, %v946_v35 }
 0x11a   : > { %2129 = vmatpush.bf16.msra.mxu0 %v3033_v27  ;;  %v3013_v27 = vor.u32 %v3181_v25, %v3012_v24 }
 0x11b   : > { %v1087_v53 = vmax.f32 %v987_v42, 0.0  ;;  %v1088_v54 = vmax.f32 %v988_v43, 0.0  ;;  %v3020_v42 = vld [vmem:[%s4214_s6 + $0x40] sm:$0xf]  ;;  %v3183_v43 = vld [vmem:[%s4214_s6 + $0x44] sm:$0xf0] }
 0x11c   : > { %v798_v39 = vpop.f32.mrf.mxu0  ;;  %v857_v40 = vpop.f32.mrf.mxu1 }
 0x11d   : > { %v906_v41 = vpack.c.bf16 %v857_v40, %v798_v39 }
 0x11f   : > { %v947_v44 = vunpack.c.l.bf16 %v906_v41  ;;  %v948_v45 = vunpack.c.h.bf16 %v906_v41 }
 0x121   : > { %v989_v51 = vadd.f32 %v3790_v37, %v947_v44  ;;  %v990_v36 = vadd.f32 %v3792_v38, %v948_v45  ;;  %v3084_v44 = vld [vmem:[%s4214_s6 + $0xc0] sm:$0xf]  ;;  %v3021_v45 = vor.u32 %v3183_v43, %v3020_v42 }
 0x122   : > { %v3085_v49 = vor.u32 %v3199_v46, %v3084_v44 }
 0x123   : > { %v1089_v55 = vmax.f32 %v989_v51, 0.0  ;;  %v1090_v56 = vmax.f32 %v990_v36, 0.0  ;;  %2012 = vmatpush.bf16.msra.mxu2 %v3021_v45 }
 0x124   : > { %v801_v57 = vpop.f32.mrf.mxu0  ;;  %v860_v58 = vpop.f32.mrf.mxu1  ;;  %2071 = vmatpush.bf16.msra.mxu3 %v3085_v49 }
 0x125   : > { %v1127_v59 = vpack.c.bf16 %v1089_v55, %v1087_v53  ;;  %v1128_v60 = vpack.c.bf16 %v1090_v56, %v1088_v54  ;;  %v907_v61 = vpack.c.bf16 %v860_v58, %v801_v57 }
 0x127   : > { %1347 = vmatmul.bf16.vlgmr.msrb.gmra.mxu2 %v1127_v59  ;;  %1406 = vmatmul.bf16.vlgmr.msrb.gmra.mxu3 %v1128_v60  ;;  %v949_v62 = vunpack.c.l.bf16 %v907_v61  ;;  %v950_v63 = vunpack.c.h.bf16 %v907_v61  ;;  %v3022_v61 = vld [vmem:[%s4214_s6 + $0x48] sm:$0xf0] }
 0x128   : > { %1465 = vmatmul.bf16.vlgmr.msrb.gmra.mxu0 %v1127_v59  ;;  %1524 = vmatmul.bf16.vlgmr.msrb.gmra.mxu1 %v1128_v60  ;;  %v3182_v60 = vld [vmem:[%s4214_s6 + $0x44] sm:$0xf] }
 0x129   : > { %v991_v5 = vadd.f32 %v3790_v37, %v949_v62  ;;  %v992_v6 = vadd.f32 %v3792_v38, %v950_v63  ;;  %v3198_v62 = vld [vmem:[%s4214_s6 + $0xc4] sm:$0xf]  ;;  %v3025_v63 = vor.u32 %v3182_v60, %v3022_v61  ;;  %2013 = vmatpush.bf16.msra.mxu2 %v3013_v27 }
 0x12b   : > { %v1091_v15 = vmax.f32 %v991_v5, 0.0  ;;  %v1092_v17 = vmax.f32 %v992_v6, 0.0  ;;  %v3854_v58 = vpop.f32.mrf.mxu2  ;;  %v3856_v59 = vpop.f32.mrf.mxu3  ;;  %2130 = vmatpush.bf16.msra.mxu0 %v3025_v63 }
 0x12c   : > { %v803_v0 = vpop.f32.mrf.mxu0  ;;  %v862_v1 = vpop.f32.mrf.mxu1 }
 0x12d   : > { %v908_v2 = vpack.c.bf16 %v862_v1, %v803_v0  ;;  %v3086_v0 = vld [vmem:[%s4214_s6 + $0xc8] sm:$0xf0] }
 0x12e   : > { %v3089_v1 = vor.u32 %v3198_v62, %v3086_v0  ;;  %v3004_v0 = vld [vmem:[%s4214_s6 + $0x20] sm:$0xf] }
 0x12f   : > { %v951_v3 = vunpack.c.l.bf16 %v908_v2  ;;  %v952_v4 = vunpack.c.h.bf16 %v908_v2 }
 0x130   : > { %2189 = vmatpush.bf16.msra.mxu1 %v3089_v1  ;;  %v3179_v1 = vld [vmem:[%s4214_s6 + $0x24] sm:$0xf0] }
 0x131   : > { %v993_v12 = vadd.f32 %v3790_v37, %v951_v3  ;;  %v994_v13 = vadd.f32 %v3792_v38, %v952_v4 }
 0x133   : > { %v1093_v16 = vmax.f32 %v993_v12, 0.0  ;;  %v1094_v18 = vmax.f32 %v994_v13, 0.0  ;;  %v823_v13 = vpop.f32.mrf.mxu2  ;;  %v882_v14 = vpop.f32.mrf.mxu3 }
 0x134   : > { %v806_v19 = vpop.f32.mrf.mxu0  ;;  %v865_v20 = vpop.f32.mrf.mxu1 }
 0x135   : > { %v1129_v21 = vpack.c.bf16 %v1093_v16, %v1091_v15  ;;  %v1130_v22 = vpack.c.bf16 %v1094_v18, %v1092_v17  ;;  %v909_v23 = vpack.c.bf16 %v865_v20, %v806_v19 }
 0x137   : > { %1352 = vmatmul.bf16.gmra.mxu2 %v1129_v21  ;;  %1411 = vmatmul.bf16.gmra.mxu3 %v1130_v22  ;;  %v953_v30 = vunpack.c.l.bf16 %v909_v23  ;;  %v954_v31 = vunpack.c.h.bf16 %v909_v23 }
 0x138   : > { %1470 = vmatmul.bf16.gmra.mxu0 %v1129_v21  ;;  %1529 = vmatmul.bf16.gmra.mxu1 %v1130_v22 }
 0x139   : > { %v995_v40 = vadd.f32 %v3790_v37, %v953_v30  ;;  %v996_v41 = vadd.f32 %v3792_v38, %v954_v31  ;;  %v3014_v30 = vld [vmem:[%s4214_s6 + $0x38] sm:$0xf0]  ;;  %v3077_v31 = vor.u32 %v3197_v28, %v3076_v26  ;;  %v2996_v28 = vld [vmem:[%s4214_s6 + $0x10] sm:$0xf] }
 0x13b   : > { %v1095_v50 = vmax.f32 %v995_v40, 0.0  ;;  %v1096_v36 = vmax.f32 %v996_v41, 0.0  ;;  %v826_v40 = vpop.f32.mrf.mxu2  ;;  %v885_v41 = vpop.f32.mrf.mxu3  ;;  %2072 = vmatpush.bf16.msra.mxu3 %v3077_v31 }
 0x13c   : > { %v808_v32 = vpop.f32.mrf.mxu0  ;;  %v867_v33 = vpop.f32.mrf.mxu1 }
 0x13d   : > { %v910_v34 = vpack.c.bf16 %v867_v33, %v808_v32  ;;  %v3017_v32 = vor.u32 %v3180_v29, %v3014_v30  ;;  %v3196_v33 = vld [vmem:[%s4214_s6 + $0xb4] sm:$0xf]  ;;  %v3177_v29 = vld [vmem:[%s4214_s6 + $0x14] sm:$0xf0]  ;;  %v3060_v30 = vld [vmem:[%s4214_s6 + $0x90] sm:$0xf] }
 0x13f   : > { %v955_v35 = vunpack.c.l.bf16 %v910_v34  ;;  %v956_v39 = vunpack.c.h.bf16 %v910_v34  ;;  %v3078_v34 = vld [vmem:[%s4214_s6 + $0xb8] sm:$0xf0]  ;;  %2131 = vmatpush.bf16.msra.mxu0 %v3017_v32 }
 0x140   : > { %v3081_v42 = vor.u32 %v3196_v33, %v3078_v34  ;;  %v2997_v34 = vor.u32 %v3177_v29, %v2996_v28  ;;  %v3191_v29 = vld [vmem:[%s4214_s6 + $0x84] sm:$0xf0] }
 0x141   : > { %v997_v47 = vadd.f32 %v3790_v37, %v955_v35  ;;  %v998_v48 = vadd.f32 %v3792_v38, %v956_v39 }
 0x142   : > { %2190 = vmatpush.bf16.msra.mxu1 %v3081_v42 }
 0x143   : > { %v1097_v51 = vmax.f32 %v997_v47, 0.0  ;;  %v1098_v52 = vmax.f32 %v998_v48, 0.0  ;;  %v828_v61 = vpop.f32.mrf.mxu2  ;;  %v887_v62 = vpop.f32.mrf.mxu3 }
 0x144   : > { %v811_v53 = vpop.f32.mrf.mxu0  ;;  %v870_v54 = vpop.f32.mrf.mxu1  ;;  %v918_v24 = vpack.c.bf16 %v887_v62, %v828_v61  ;;  %v3062_v61 = vld [vmem:[%s4214_s6 + $0x98] sm:$0xf0] }
 0x145   : > { %v1131_v55 = vpack.c.bf16 %v1097_v51, %v1095_v50  ;;  %v1132_v56 = vpack.c.bf16 %v1098_v52, %v1096_v36  ;;  %v911_v57 = vpack.c.bf16 %v870_v54, %v811_v53 }
 0x146   : > { %v971_v32 = vunpack.c.l.bf16 %v918_v24  ;;  %v972_v33 = vunpack.c.h.bf16 %v918_v24 }
 0x147   : > { %1357 = vmatmul.bf16.gmra.mxu2 %v1131_v55  ;;  %1416 = vmatmul.bf16.gmra.mxu3 %v1132_v56  ;;  %v957_v2 = vunpack.c.l.bf16 %v911_v57  ;;  %v958_v3 = vunpack.c.h.bf16 %v911_v57 }
 0x148   : > { %1475 = vmatmul.bf16.gmra.mxu0 %v1131_v55  ;;  %1534 = vmatmul.bf16.gmra.mxu1 %v1132_v56  ;;  %v915_v55 = vpack.c.bf16 %v3856_v59, %v3854_v58  ;;  %v916_v56 = vpack.c.bf16 %v882_v14, %v823_v13  ;;  %v3068_v58 = vld [vmem:[%s4214_s6 + $0xa0] sm:$0xf] }
 0x149   : > { %v999_v9 = vadd.f32 %v3790_v37, %v957_v2  ;;  %v1000_v10 = vadd.f32 %v3792_v38, %v958_v3 }
 0x14a   : > { %v965_v63 = vunpack.c.l.bf16 %v915_v55  ;;  %v966_v59 = vunpack.c.h.bf16 %v915_v55  ;;  %v967_v2 = vunpack.c.l.bf16 %v916_v56  ;;  %v968_v3 = vunpack.c.h.bf16 %v916_v56  ;;  %v3176_v55 = vld [vmem:[%s4214_s6 + $0x14] sm:$0xf]  ;;  %v2998_v56 = vld [vmem:[%s4214_s6 + $0x18] sm:$0xf0] }
 0x14b   : > { %v1099_v15 = vmax.f32 %v999_v9, 0.0  ;;  %v1100_v17 = vmax.f32 %v1000_v10, 0.0  ;;  %v3194_v10 = vld [vmem:[%s4214_s6 + $0xa4] sm:$0xf] }
 0x14c   : > { %v813_v4 = vpop.f32.mrf.mxu0  ;;  %v872_v5 = vpop.f32.mrf.mxu1  ;;  %v1007_v13 = vadd.f32 %v3790_v37, %v965_v63  ;;  %v1009_v14 = vadd.f32 %v3790_v37, %v967_v2 }
 0x14d   : > { %v912_v6 = vpack.c.bf16 %v872_v5, %v813_v4  ;;  %v3005_v4 = vor.u32 %v3179_v1, %v3004_v0  ;;  %v3195_v5 = vld [vmem:[%s4214_s6 + $0xa4] sm:$0xf0] }
 0x14f   : > { %v959_v7 = vunpack.c.l.bf16 %v912_v6  ;;  %v960_v8 = vunpack.c.h.bf16 %v912_v6  ;;  %v3178_v6 = vld [vmem:[%s4214_s6 + $0x24] sm:$0xf]  ;;  %2014 = vmatpush.bf16.msra.mxu2 %v3005_v4 }
 0x151   : > { %v1001_v11 = vadd.f32 %v3790_v37, %v959_v7  ;;  %v1002_v12 = vadd.f32 %v3792_v38, %v960_v8  ;;  %v3006_v7 = vld [vmem:[%s4214_s6 + $0x28] sm:$0xf0]  ;;  %v3069_v8 = vor.u32 %v3195_v5, %v3068_v58 }
 0x152   : > { %v3009_v9 = vor.u32 %v3178_v6, %v3006_v7 }
 0x153   : > { %v1101_v16 = vmax.f32 %v1001_v11, 0.0  ;;  %v1102_v18 = vmax.f32 %v1002_v12, 0.0  ;;  %v3070_v11 = vld [vmem:[%s4214_s6 + $0xa8] sm:$0xf0]  ;;  %2073 = vmatpush.bf16.msra.mxu3 %v3069_v8  ;;  %2015 = vmatpush.bf16.msra.mxu2 %v2997_v34 }
 0x154   : > { %v816_v19 = vpop.f32.mrf.mxu0  ;;  %v875_v20 = vpop.f32.mrf.mxu1  ;;  %v3073_v12 = vor.u32 %v3194_v10, %v3070_v11  ;;  %2132 = vmatpush.bf16.msra.mxu0 %v3009_v9 }
 0x155   : > { %v1133_v21 = vpack.c.bf16 %v1101_v16, %v1099_v15  ;;  %v1134_v22 = vpack.c.bf16 %v1102_v18, %v1100_v17  ;;  %v913_v23 = vpack.c.bf16 %v875_v20, %v816_v19  ;;  %v1008_v15 = vadd.f32 %v3792_v38, %v966_v59  ;;  %v831_v17 = vpop.f32.mrf.mxu2  ;;  %v890_v18 = vpop.f32.mrf.mxu3 }
 0x156   : > { %v1010_v16 = vadd.f32 %v3792_v38, %v968_v3  ;;  %2191 = vmatpush.bf16.msra.mxu1 %v3073_v12  ;;  %v1107_v19 = vmax.f32 %v1007_v13, 0.0  ;;  %v1109_v20 = vmax.f32 %v1009_v14, 0.0 }
 0x157   : > { %1362 = vmatmul.bf16.gmra.mxu2 %v1133_v21  ;;  %1421 = vmatmul.bf16.gmra.mxu3 %v1134_v22  ;;  %v961_v35 = vunpack.c.l.bf16 %v913_v23  ;;  %v962_v39 = vunpack.c.h.bf16 %v913_v23  ;;  %v917_v23 = vpack.c.bf16 %v885_v41, %v826_v40 }
 0x158   : > { %1480 = vmatmul.bf16.gmra.mxu0 %v1133_v21  ;;  %1539 = vmatmul.bf16.gmra.mxu1 %v1134_v22  ;;  %v1108_v21 = vmax.f32 %v1008_v15, 0.0  ;;  %v1110_v22 = vmax.f32 %v1010_v16, 0.0  ;;  %v1137_v25 = vpack.c.bf16 %v1109_v20, %v1107_v19 }
 0x159   : > { %v1003_v48 = vadd.f32 %v3790_v37, %v961_v35  ;;  %v1004_v49 = vadd.f32 %v3792_v38, %v962_v39  ;;  %v969_v27 = vunpack.c.l.bf16 %v917_v23  ;;  %v970_v31 = vunpack.c.h.bf16 %v917_v23  ;;  %v3193_v35 = vld [vmem:[%s4214_s6 + $0x94] sm:$0xf0] }
 0x15a   : > { %v1138_v26 = vpack.c.bf16 %v1110_v22, %v1108_v21  ;;  %v3061_v41 = vor.u32 %v3193_v35, %v3060_v30  ;;  %v3174_v30 = vld [vmem:[%s4214_s6 + $0x4] sm:$0xf] }
 0x15b   : > { %v1103_v36 = vmax.f32 %v1003_v48, 0.0  ;;  %v1104_v53 = vmax.f32 %v1004_v49, 0.0  ;;  %v1011_v42 = vadd.f32 %v3790_v37, %v969_v27  ;;  %v3052_v27 = vld [vmem:[%s4214_s6 + $0x80] sm:$0xf]  ;;  %v3190_v35 = vld [vmem:[%s4214_s6 + $0x84] sm:$0xf] }
 0x15c   : > { %v818_v43 = vpop.f32.mrf.mxu0  ;;  %v877_v44 = vpop.f32.mrf.mxu1  ;;  %2074 = vmatpush.bf16.msra.mxu3 %v3061_v41 }
 0x15d   : > { %v914_v45 = vpack.c.bf16 %v877_v44, %v818_v43  ;;  %v833_v39 = vpop.f32.mrf.mxu2  ;;  %v892_v40 = vpop.f32.mrf.mxu3  ;;  %v1013_v43 = vadd.f32 %v3790_v37, %v971_v32  ;;  %v1012_v44 = vadd.f32 %v3792_v38, %v970_v31  ;;  %v2990_v31 = vld [vmem:[%s4214_s6 + $0x8] sm:$0xf0]  ;;  %v1595_v32 = vld [vmem:[%s4213_s5] sm:$0x3] }
 0x15e   : > { %v2993_v34 = vor.u32 %v3174_v30, %v2990_v31 }
 0x15f   : > { %v963_v46 = vunpack.c.l.bf16 %v914_v45  ;;  %v964_v47 = vunpack.c.h.bf16 %v914_v45  ;;  %v1014_v45 = vadd.f32 %v3792_v38, %v972_v33  ;;  %v1112_v48 = vmax.f32 %v1012_v44, 0.0 }
 0x160   : > { %v3053_v33 = vor.u32 %v3191_v29, %v3052_v27 }
 0x161   : > { %v1005_v50 = vadd.f32 %v3790_v37, %v963_v46  ;;  %v1006_v51 = vadd.f32 %v3792_v38, %v964_v47  ;;  %v1111_v46 = vmax.f32 %v1011_v42, 0.0  ;;  %v1113_v47 = vmax.f32 %v1013_v43, 0.0 }
 0x162   : > { %v1114_v49 = vmax.f32 %v1014_v45, 0.0  ;;  %2075 = vmatpush.bf16.msra.mxu3 %v3053_v33 }
 0x163   : > { %v1105_v52 = vmax.f32 %v1005_v50, 0.0  ;;  %v1106_v54 = vmax.f32 %v1006_v51, 0.0 }
 0x165   : > { %v1135_v57 = vpack.c.bf16 %v1105_v52, %v1103_v36  ;;  %v1136_v60 = vpack.c.bf16 %v1106_v54, %v1104_v53  ;;  %v836_v50 = vpop.f32.mrf.mxu2  ;;  %v895_v51 = vpop.f32.mrf.mxu3  ;;  %v919_v36 = vpack.c.bf16 %v890_v18, %v831_v17  ;;  %v920_v52 = vpack.c.bf16 %v892_v40, %v833_v39  ;;  %v3054_v39 = vld [vmem:[%s4214_s6 + $0x88] sm:$0xf0] }
 0x166   : > { %v1139_v53 = vpack.c.bf16 %v1113_v47, %v1111_v46  ;;  %v1140_v54 = vpack.c.bf16 %v1114_v49, %v1112_v48  ;;  %v921_v11 = vpack.c.bf16 %v895_v51, %v836_v50  ;;  %v3057_v40 = vor.u32 %v3190_v35, %v3054_v39 }
 0x167   : > { %1367 = vmatmul.bf16.gmra.mxu2 %v1135_v57  ;;  %1426 = vmatmul.bf16.gmra.mxu3 %v1136_v60  ;;  %v973_v63 = vunpack.c.l.bf16 %v919_v36  ;;  %v974_v0 = vunpack.c.h.bf16 %v919_v36  ;;  %v975_v1 = vunpack.c.l.bf16 %v920_v52  ;;  %v976_v58 = vunpack.c.h.bf16 %v920_v52 }
 0x168   : > { %1485 = vmatmul.bf16.gmra.mxu0 %v1135_v57  ;;  %1544 = vmatmul.bf16.gmra.mxu1 %v1136_v60  ;;  %v3192_v57 = vld [vmem:[%s4214_s6 + $0x94] sm:$0xf]  ;;  %v3001_v60 = vor.u32 %v3176_v55, %v2998_v56  ;;  %v977_v17 = vunpack.c.l.bf16 %v921_v11  ;;  %v978_v18 = vunpack.c.h.bf16 %v921_v11  ;;  %v1597_v47 = vperm.slane %v1595_v32, 0 }
 0x169   : > { %v3065_v62 = vor.u32 %v3192_v57, %v3062_v61  ;;  %v1015_v59 = vadd.f32 %v3790_v37, %v973_v63  ;;  %v1016_v2 = vadd.f32 %v3792_v38, %v974_v0  ;;  %v1017_v3 = vadd.f32 %v3790_v37, %v975_v1 }
 0x16a   : > { %2133 = vmatpush.bf16.msra.mxu0 %v3001_v60  ;;  %v1018_v4 = vadd.f32 %v3792_v38, %v976_v58  ;;  %v1019_v21 = vadd.f32 %v3790_v37, %v977_v17  ;;  %v1020_v22 = vadd.f32 %v3792_v38, %v978_v18  ;;  %v1598_v48 = vperm.slane %v1595_v32, 1 }
 0x16b   : > { %2192 = vmatpush.bf16.msra.mxu1 %v3065_v62  ;;  %v1115_v7 = vmax.f32 %v1015_v59, 0.0  ;;  %v1116_v8 = vmax.f32 %v1016_v2, 0.0  ;;  %v1117_v9 = vmax.f32 %v1017_v3, 0.0 }
 0x16c   : > { %v1118_v10 = vmax.f32 %v1018_v4, 0.0  ;;  %v1119_v41 = vmax.f32 %v1019_v21, 0.0  ;;  %v1120_v42 = vmax.f32 %v1020_v22, 0.0 }
 0x16d   : > { %v838_v5 = vpop.f32.mrf.mxu2  ;;  %v897_v6 = vpop.f32.mrf.mxu3  ;;  %v1141_v13 = vpack.c.bf16 %v1117_v9, %v1115_v7 }
 0x16e   : > { %v922_v12 = vpack.c.bf16 %v897_v6, %v838_v5  ;;  %v1142_v14 = vpack.c.bf16 %v1118_v10, %v1116_v8  ;;  %2134 = vmatpush.bf16.msra.mxu0 %v2993_v34 }
 0x16f   : > { %2193 = vmatpush.bf16.msra.mxu1 %v3057_v40 }
 0x170   : > { %v979_v19 = vunpack.c.l.bf16 %v922_v12  ;;  %v980_v20 = vunpack.c.h.bf16 %v922_v12 }
 0x172   : > { %v1021_v23 = vadd.f32 %v3790_v37, %v979_v19  ;;  %v1022_v24 = vadd.f32 %v3792_v38, %v980_v20 }
 0x174   : > { %v1121_v43 = vmax.f32 %v1021_v23, 0.0  ;;  %v1122_v44 = vmax.f32 %v1022_v24, 0.0 }
 0x175   : > { %v841_v15 = vpop.f32.mrf.mxu2  ;;  %v900_v16 = vpop.f32.mrf.mxu3 }
 0x176   : > { %v923_v49 = vpack.c.bf16 %v900_v16, %v841_v15  ;;  %v1143_v52 = vpack.c.bf16 %v1121_v43, %v1119_v41 }
 0x177   : > { %1372 = vmatmul.bf16.gmra.mxu2 %v1137_v25  ;;  %1431 = vmatmul.bf16.gmra.mxu3 %v1138_v26 }
 0x178   : > { %1490 = vmatmul.bf16.gmra.mxu0 %v1137_v25  ;;  %1549 = vmatmul.bf16.gmra.mxu1 %v1138_v26  ;;  %v2988_v25 = vld [vmem:[%s4214_s6] sm:$0xf]  ;;  %v3175_v26 = vld [vmem:[%s4214_s6 + $0x4] sm:$0xf0]  ;;  %v981_v55 = vunpack.c.l.bf16 %v923_v49  ;;  %v982_v56 = vunpack.c.h.bf16 %v923_v49 }
 0x179   : > { %v2989_v28 = vor.u32 %v3175_v26, %v2988_v25 }
 0x17a   : > { %v1023_v1 = vadd.f32 %v3790_v37, %v981_v55  ;;  %v1024_v58 = vadd.f32 %v3792_v38, %v982_v56 }
 0x17b   : > { %2016 = vmatpush.bf16.msra.mxu2 %v2989_v28 }
 0x17c   : > { %v1123_v7 = vmax.f32 %v1023_v1, 0.0  ;;  %v1124_v8 = vmax.f32 %v1024_v58, 0.0 }
 0x17d   : > { %v843_v45 = vpop.f32.mrf.mxu2  ;;  %v902_v46 = vpop.f32.mrf.mxu3 }
 0x17e   : > { %v924_v50 = vpack.c.bf16 %v902_v46, %v843_v45 }
 0x180   : > { %v983_v57 = vunpack.c.l.bf16 %v924_v50  ;;  %v984_v60 = vunpack.c.h.bf16 %v924_v50 }
 0x182   : > { %v1025_v59 = vadd.f32 %v3790_v37, %v983_v57  ;;  %v1026_v2 = vadd.f32 %v3792_v38, %v984_v60 }
 0x184   : > { %v1125_v9 = vmax.f32 %v1025_v59, 0.0  ;;  %v1126_v10 = vmax.f32 %v1026_v2, 0.0 }
 0x186   : > { %v1145_v38 = vpack.c.bf16 %v1125_v9, %v1123_v7  ;;  %v1146_v21 = vpack.c.bf16 %v1126_v10, %v1124_v8 }
 0x187   : > { %1377 = vmatmul.bf16.gmra.mxu2 %v1139_v53  ;;  %1436 = vmatmul.bf16.gmra.mxu3 %v1140_v54 }
 0x188   : > { %1495 = vmatmul.bf16.gmra.mxu0 %v1139_v53  ;;  %1554 = vmatmul.bf16.gmra.mxu1 %v1140_v54  ;;  %v1144_v53 = vpack.c.bf16 %v1122_v44, %v1120_v42  ;;  %v1601_v54 = vpack.c.bf16 %v1598_v48, %v1597_v47 }
 0x18a   : > { %v1603_v63 = vunpack.c.l.b16 %v1601_v54  ;;  %v1604_v0 = vunpack.c.h.b16 %v1601_v54 }
 0x18c   : > { %v1605_v5 = vpack.c.b16 %v1603_v63, %v1603_v63  ;;  %v1606_v6 = vpack.c.b16 %v1604_v0, %v1604_v0 }
 0x18e   : > { %v1608_v11 = vpack.i.b16 %v1605_v5, %v1605_v5  ;;  %v1612_v15 = vpack.i.b16 %v1606_v6, %v1606_v6 }
 0x190   : > { %v1610_v23 = vperm.slane %v1608_v11, 0  ;;  %v1614_v24 = vperm.slane %v1612_v15, 0 }
 0x192   : > { %v3999_v31 = vunpack.c.l.bf16 %v1610_v23  ;;  %v4001_v32 = vunpack.c.l.bf16 %v1614_v24 }
 0x197   : > { %1382 = vmatmul.bf16.gmra.mxu2 %v1141_v13  ;;  %1441 = vmatmul.bf16.gmra.mxu3 %v1142_v14 }
 0x198   : > { %1500 = vmatmul.bf16.gmra.mxu0 %v1141_v13  ;;  %1559 = vmatmul.bf16.gmra.mxu1 %v1142_v14 }
 0x1a5   : > { %v1466_v51 = vpop.f32.mrf.mxu0  ;;  %v1525_v36 = vpop.f32.mrf.mxu1 }
 0x1a6   : > { %v1526_v18 = vadd.f32 %v1525_v36, %v1466_v51 }
 0x1a7   : > { %1387 = vmatmul.bf16.gmra.mxu2 %v1143_v52  ;;  %1446 = vmatmul.bf16.gmra.mxu3 %v1144_v53 }
 0x1a8   : > { %1505 = vmatmul.bf16.gmra.mxu0 %v1143_v52  ;;  %1564 = vmatmul.bf16.gmra.mxu1 %v1144_v53 }
 0x1aa   : > { %v1348_v61 = vpop.f32.mrf.mxu2  ;;  %v1407_v62 = vpop.f32.mrf.mxu3 }
 0x1ab   : > { %v1408_v14 = vadd.f32 %v1407_v62, %v1348_v61 }
 0x1ad   : > { %v1468_v3 = vpop.f32.mrf.mxu0  ;;  %v1527_v4 = vpop.f32.mrf.mxu1  ;;  %v1575_v22 = vpack.c.bf16 %v1526_v18, %v1408_v14 }
 0x1ae   : > { %v1528_v16 = vadd.f32 %v1527_v4, %v1468_v3 }
 0x1af   : > { %v1615_v29 = vunpack.c.l.bf16 %v1575_v22  ;;  %v1616_v30 = vunpack.c.h.bf16 %v1575_v22 }
 0x1b1   : > { %v1657_v40 = vadd.f32 %v3999_v31, %v1615_v29  ;;  %v1658_v41 = vadd.f32 %v4001_v32, %v1616_v30 }
 0x1b2   : > { %v1350_v12 = vpop.f32.mrf.mxu2  ;;  %v1409_v13 = vpop.f32.mrf.mxu3 }
 0x1b3   : > { %v1410_v17 = vadd.f32 %v1409_v13, %v1350_v12  ;;  %v1757_v47 = vmax.f32 %v1657_v40, 0.0  ;;  %v1758_v48 = vmax.f32 %v1658_v41, 0.0 }
 0x1b5   : > { %v1576_v19 = vpack.c.bf16 %v1528_v16, %v1410_v17  ;;  %v1471_v37 = vpop.f32.mrf.mxu0  ;;  %v1530_v20 = vpop.f32.mrf.mxu1 }
 0x1b6   : > { %v1531_v51 = vadd.f32 %v1530_v20, %v1471_v37 }
 0x1b7   : > { %1392 = vmatmul.bf16.gmra.mxu2 %v1145_v38  ;;  %1451 = vmatmul.bf16.gmra.mxu3 %v1146_v21  ;;  %v1617_v25 = vunpack.c.l.bf16 %v1576_v19  ;;  %v1618_v26 = vunpack.c.h.bf16 %v1576_v19 }
 0x1b8   : > { %1510 = vmatmul.bf16.gmra.mxu0 %v1145_v38  ;;  %1569 = vmatmul.bf16.gmra.mxu1 %v1146_v21 }
 0x1b9   : > { %v1659_v33 = vadd.f32 %v3999_v31, %v1617_v25  ;;  %v1660_v34 = vadd.f32 %v4001_v32, %v1618_v26 }
 0x1ba   : > { %v1353_v27 = vpop.f32.mrf.mxu2  ;;  %v1412_v28 = vpop.f32.mrf.mxu3 }
 0x1bb   : > { %v1759_v42 = vmax.f32 %v1659_v33, 0.0  ;;  %v1760_v43 = vmax.f32 %v1660_v34, 0.0  ;;  %v1413_v44 = vadd.f32 %v1412_v28, %v1353_v27 }
 0x1bd   : > { %v1473_v35 = vpop.f32.mrf.mxu0  ;;  %v1532_v39 = vpop.f32.mrf.mxu1  ;;  %v1797_v36 = vpack.c.bf16 %v1759_v42, %v1757_v47  ;;  %v1798_v52 = vpack.c.bf16 %v1760_v43, %v1758_v48  ;;  %v1577_v56 = vpack.c.bf16 %v1531_v51, %v1413_v44 }
 0x1be   : > { %v1533_v49 = vadd.f32 %v1532_v39, %v1473_v35 }
 0x1bf   : > { %v1619_v61 = vunpack.c.l.bf16 %v1577_v56  ;;  %v1620_v0 = vunpack.c.h.bf16 %v1577_v56 }
 0x1c1   : > { %v1661_v3 = vadd.f32 %v3999_v31, %v1619_v61  ;;  %v1662_v4 = vadd.f32 %v4001_v32, %v1620_v0 }
 0x1c2   : > { %v1355_v45 = vpop.f32.mrf.mxu2  ;;  %v1414_v46 = vpop.f32.mrf.mxu3 }
 0x1c3   : > { %v1415_v50 = vadd.f32 %v1414_v46, %v1355_v45  ;;  %v1761_v9 = vmax.f32 %v1661_v3, 0.0  ;;  %v1762_v13 = vmax.f32 %v1662_v4, 0.0 }
 0x1c5   : > { %v1578_v53 = vpack.c.bf16 %v1533_v49, %v1415_v50  ;;  %v1476_v54 = vpop.f32.mrf.mxu0  ;;  %v1535_v55 = vpop.f32.mrf.mxu1 }
 0x1c6   : > { %v1536_v14 = vadd.f32 %v1535_v55, %v1476_v54 }
 0x1c7   : > { %2017 = vmatmul.bf16.vlgmr.msra.gmra.mxu2 %v1797_v36  ;;  %2076 = vmatmul.bf16.vlgmr.msra.gmra.mxu3 %v1798_v52  ;;  %v1621_v57 = vunpack.c.l.bf16 %v1578_v53  ;;  %v1622_v60 = vunpack.c.h.bf16 %v1578_v53 }
 0x1c8   : > { %2135 = vmatmul.bf16.vlgmr.msra.gmra.mxu0 %v1797_v36  ;;  %2194 = vmatmul.bf16.vlgmr.msra.gmra.mxu1 %v1798_v52 }
 0x1c9   : > { %v1663_v59 = vadd.f32 %v3999_v31, %v1621_v57  ;;  %v1664_v2 = vadd.f32 %v4001_v32, %v1622_v60 }
 0x1ca   : > { %v1358_v62 = vpop.f32.mrf.mxu2  ;;  %v1417_v63 = vpop.f32.mrf.mxu3 }
 0x1cb   : > { %v1763_v5 = vmax.f32 %v1663_v59, 0.0  ;;  %v1764_v6 = vmax.f32 %v1664_v2, 0.0  ;;  %v1418_v10 = vadd.f32 %v1417_v63, %v1358_v62 }
 0x1cd   : > { %v1478_v1 = vpop.f32.mrf.mxu0  ;;  %v1537_v58 = vpop.f32.mrf.mxu1  ;;  %v1799_v18 = vpack.c.bf16 %v1763_v5, %v1761_v9  ;;  %v1800_v19 = vpack.c.bf16 %v1764_v6, %v1762_v13  ;;  %v1579_v37 = vpack.c.bf16 %v1536_v14, %v1418_v10 }
 0x1ce   : > { %v1538_v11 = vadd.f32 %v1537_v58, %v1478_v1 }
 0x1cf   : > { %v1623_v23 = vunpack.c.l.bf16 %v1579_v37  ;;  %v1624_v24 = vunpack.c.h.bf16 %v1579_v37 }
 0x1d1   : > { %v1665_v29 = vadd.f32 %v3999_v31, %v1623_v23  ;;  %v1666_v30 = vadd.f32 %v4001_v32, %v1624_v24 }
 0x1d2   : > { %v1360_v7 = vpop.f32.mrf.mxu2  ;;  %v1419_v8 = vpop.f32.mrf.mxu3 }
 0x1d3   : > { %v1420_v12 = vadd.f32 %v1419_v8, %v1360_v7  ;;  %v1765_v43 = vmax.f32 %v1665_v29, 0.0  ;;  %v1766_v44 = vmax.f32 %v1666_v30, 0.0 }
 0x1d5   : > { %v1580_v15 = vpack.c.bf16 %v1538_v11, %v1420_v12  ;;  %v1481_v16 = vpop.f32.mrf.mxu0  ;;  %v1540_v17 = vpop.f32.mrf.mxu1 }
 0x1d6   : > { %v1541_v45 = vadd.f32 %v1540_v17, %v1481_v16 }
 0x1d7   : > { %2022 = vmatmul.bf16.gmra.mxu2 %v1799_v18  ;;  %2081 = vmatmul.bf16.gmra.mxu3 %v1800_v19  ;;  %v1625_v20 = vunpack.c.l.bf16 %v1580_v15  ;;  %v1626_v38 = vunpack.c.h.bf16 %v1580_v15 }
 0x1d8   : > { %2140 = vmatmul.bf16.gmra.mxu0 %v1799_v18  ;;  %2199 = vmatmul.bf16.gmra.mxu1 %v1800_v19 }
 0x1d9   : > { %v1667_v27 = vadd.f32 %v3999_v31, %v1625_v20  ;;  %v1668_v28 = vadd.f32 %v4001_v32, %v1626_v38 }
 0x1da   : > { %v1363_v21 = vpop.f32.mrf.mxu2  ;;  %v1422_v22 = vpop.f32.mrf.mxu3 }
 0x1db   : > { %v1767_v33 = vmax.f32 %v1667_v27, 0.0  ;;  %v1768_v34 = vmax.f32 %v1668_v28, 0.0  ;;  %v1423_v35 = vadd.f32 %v1422_v22, %v1363_v21 }
 0x1dd   : > { %v1483_v25 = vpop.f32.mrf.mxu0  ;;  %v1542_v26 = vpop.f32.mrf.mxu1  ;;  %v1801_v49 = vpack.c.bf16 %v1767_v33, %v1765_v43  ;;  %v1802_v50 = vpack.c.bf16 %v1768_v34, %v1766_v44  ;;  %v1581_v51 = vpack.c.bf16 %v1541_v45, %v1423_v35 }
 0x1de   : > { %v1543_v41 = vadd.f32 %v1542_v26, %v1483_v25 }
 0x1df   : > { %v1627_v53 = vunpack.c.l.bf16 %v1581_v51  ;;  %v1628_v56 = vunpack.c.h.bf16 %v1581_v51 }
 0x1e1   : > { %v1669_v63 = vadd.f32 %v3999_v31, %v1627_v53  ;;  %v1670_v0 = vadd.f32 %v4001_v32, %v1628_v56 }
 0x1e2   : > { %v1365_v39 = vpop.f32.mrf.mxu2  ;;  %v1424_v40 = vpop.f32.mrf.mxu3 }
 0x1e3   : > { %v1425_v42 = vadd.f32 %v1424_v40, %v1365_v39  ;;  %v1769_v3 = vmax.f32 %v1669_v63, 0.0  ;;  %v1770_v7 = vmax.f32 %v1670_v0, 0.0 }
 0x1e5   : > { %v1582_v46 = vpack.c.bf16 %v1543_v41, %v1425_v42  ;;  %v1486_v47 = vpop.f32.mrf.mxu0  ;;  %v1545_v48 = vpop.f32.mrf.mxu1 }
 0x1e6   : > { %v1546_v8 = vadd.f32 %v1545_v48, %v1486_v47 }
 0x1e7   : > { %2027 = vmatmul.bf16.gmra.mxu2 %v1801_v49  ;;  %2086 = vmatmul.bf16.gmra.mxu3 %v1802_v50  ;;  %v1629_v36 = vunpack.c.l.bf16 %v1582_v46  ;;  %v1630_v52 = vunpack.c.h.bf16 %v1582_v46 }
 0x1e8   : > { %2145 = vmatmul.bf16.gmra.mxu0 %v1801_v49  ;;  %2204 = vmatmul.bf16.gmra.mxu1 %v1802_v50 }
 0x1e9   : > { %v1671_v61 = vadd.f32 %v3999_v31, %v1629_v36  ;;  %v1672_v62 = vadd.f32 %v4001_v32, %v1630_v52 }
 0x1ea   : > { %v1368_v54 = vpop.f32.mrf.mxu2  ;;  %v1427_v55 = vpop.f32.mrf.mxu3 }
 0x1eb   : > { %v1771_v1 = vmax.f32 %v1671_v61, 0.0  ;;  %v1772_v58 = vmax.f32 %v1672_v62, 0.0  ;;  %v1428_v4 = vadd.f32 %v1427_v55, %v1368_v54 }
 0x1ed   : > { %v1488_v57 = vpop.f32.mrf.mxu0  ;;  %v1547_v60 = vpop.f32.mrf.mxu1  ;;  %v1803_v12 = vpack.c.bf16 %v1771_v1, %v1769_v3  ;;  %v1804_v13 = vpack.c.bf16 %v1772_v58, %v1770_v7  ;;  %v1583_v14 = vpack.c.bf16 %v1546_v8, %v1428_v4 }
 0x1ee   : > { %v1548_v5 = vadd.f32 %v1547_v60, %v1488_v57 }
 0x1ef   : > { %v1631_v19 = vunpack.c.l.bf16 %v1583_v14  ;;  %v1632_v37 = vunpack.c.h.bf16 %v1583_v14 }
 0x1f1   : > { %v1673_v23 = vadd.f32 %v3999_v31, %v1631_v19  ;;  %v1674_v24 = vadd.f32 %v4001_v32, %v1632_v37 }
 0x1f2   : > { %v1370_v59 = vpop.f32.mrf.mxu2  ;;  %v1429_v2 = vpop.f32.mrf.mxu3 }
 0x1f3   : > { %v1430_v6 = vadd.f32 %v1429_v2, %v1370_v59  ;;  %v1773_v34 = vmax.f32 %v1673_v23, 0.0  ;;  %v1774_v35 = vmax.f32 %v1674_v24, 0.0 }
 0x1f5   : > { %v1584_v9 = vpack.c.bf16 %v1548_v5, %v1430_v6  ;;  %v1491_v10 = vpop.f32.mrf.mxu0  ;;  %v1550_v11 = vpop.f32.mrf.mxu1 }
 0x1f6   : > { %v1551_v39 = vadd.f32 %v1550_v11, %v1491_v10 }
 0x1f7   : > { %2032 = vmatmul.bf16.gmra.mxu2 %v1803_v12  ;;  %2091 = vmatmul.bf16.gmra.mxu3 %v1804_v13  ;;  %v1633_v15 = vunpack.c.l.bf16 %v1584_v9  ;;  %v1634_v16 = vunpack.c.h.bf16 %v1584_v9 }
 0x1f8   : > { %2150 = vmatmul.bf16.gmra.mxu0 %v1803_v12  ;;  %2209 = vmatmul.bf16.gmra.mxu1 %v1804_v13 }
 0x1f9   : > { %v1675_v21 = vadd.f32 %v3999_v31, %v1633_v15  ;;  %v1676_v22 = vadd.f32 %v4001_v32, %v1634_v16 }
 0x1fa   : > { %v1373_v17 = vpop.f32.mrf.mxu2  ;;  %v1432_v18 = vpop.f32.mrf.mxu3 }
 0x1fb   : > { %v1775_v25 = vmax.f32 %v1675_v21, 0.0  ;;  %v1776_v26 = vmax.f32 %v1676_v22, 0.0  ;;  %v1433_v27 = vadd.f32 %v1432_v18, %v1373_v17 }
 0x1fd   : > { %v1493_v20 = vpop.f32.mrf.mxu0  ;;  %v1552_v38 = vpop.f32.mrf.mxu1  ;;  %v1805_v43 = vpack.c.bf16 %v1775_v25, %v1773_v34  ;;  %v1806_v44 = vpack.c.bf16 %v1776_v26, %v1774_v35  ;;  %v1585_v45 = vpack.c.bf16 %v1551_v39, %v1433_v27 }
 0x1fe   : > { %v1553_v30 = vadd.f32 %v1552_v38, %v1493_v20 }
 0x1ff   : > { %v1635_v48 = vunpack.c.l.bf16 %v1585_v45  ;;  %v1636_v51 = vunpack.c.h.bf16 %v1585_v45 }
 0x201   : > { %v1677_v55 = vadd.f32 %v3999_v31, %v1635_v48  ;;  %v1678_v56 = vadd.f32 %v4001_v32, %v1636_v51 }
 0x202   : > { %v1375_v28 = vpop.f32.mrf.mxu2  ;;  %v1434_v29 = vpop.f32.mrf.mxu3 }
 0x203   : > { %v1435_v33 = vadd.f32 %v1434_v29, %v1375_v28  ;;  %v1777_v63 = vmax.f32 %v1677_v55, 0.0  ;;  %v1778_v59 = vmax.f32 %v1678_v56, 0.0 }
 0x205   : > { %v1586_v40 = vpack.c.bf16 %v1553_v30, %v1435_v33  ;;  %v1496_v41 = vpop.f32.mrf.mxu0  ;;  %v1555_v42 = vpop.f32.mrf.mxu1 }
 0x206   : > { %v1556_v2 = vadd.f32 %v1555_v42, %v1496_v41 }
 0x207   : > { %2037 = vmatmul.bf16.gmra.mxu2 %v1805_v43  ;;  %2096 = vmatmul.bf16.gmra.mxu3 %v1806_v44  ;;  %v1637_v46 = vunpack.c.l.bf16 %v1586_v40  ;;  %v1638_v47 = vunpack.c.h.bf16 %v1586_v40 }
 0x208   : > { %2155 = vmatmul.bf16.gmra.mxu0 %v1805_v43  ;;  %2214 = vmatmul.bf16.gmra.mxu1 %v1806_v44 }
 0x209   : > { %v1679_v53 = vadd.f32 %v3999_v31, %v1637_v46  ;;  %v1680_v54 = vadd.f32 %v4001_v32, %v1638_v47 }
 0x20a   : > { %v1378_v49 = vpop.f32.mrf.mxu2  ;;  %v1437_v50 = vpop.f32.mrf.mxu3 }
 0x20b   : > { %v1779_v57 = vmax.f32 %v1679_v53, 0.0  ;;  %v1780_v60 = vmax.f32 %v1680_v54, 0.0  ;;  %v1438_v0 = vadd.f32 %v1437_v50, %v1378_v49  ;;  %v2265_v53 = vld [vmem:[%s4215_s7] sm:$0x3] }
 0x20d   : > { %v1498_v36 = vpop.f32.mrf.mxu0  ;;  %v1557_v52 = vpop.f32.mrf.mxu1  ;;  %v1807_v6 = vpack.c.bf16 %v1779_v57, %v1777_v63  ;;  %v1808_v7 = vpack.c.bf16 %v1780_v60, %v1778_v59  ;;  %v1587_v8 = vpack.c.bf16 %v1556_v2, %v1438_v0  ;;  %v2267_v63 = vperm.slane %v2265_v53, 0 }
 0x20e   : > { %v1558_v1 = vadd.f32 %v1557_v52, %v1498_v36  ;;  %v2268_v0 = vperm.slane %v2265_v53, 1 }
 0x20f   : > { %v1639_v13 = vunpack.c.l.bf16 %v1587_v8  ;;  %v1640_v14 = vunpack.c.h.bf16 %v1587_v8 }
 0x211   : > { %v1681_v19 = vadd.f32 %v3999_v31, %v1639_v13  ;;  %v1682_v37 = vadd.f32 %v4001_v32, %v1640_v14 }
 0x212   : > { %v1380_v61 = vpop.f32.mrf.mxu2  ;;  %v1439_v62 = vpop.f32.mrf.mxu3 }
 0x213   : > { %v1440_v58 = vadd.f32 %v1439_v62, %v1380_v61  ;;  %v1781_v26 = vmax.f32 %v1681_v19, 0.0  ;;  %v1782_v27 = vmax.f32 %v1682_v37, 0.0 }
 0x215   : > { %v1588_v3 = vpack.c.bf16 %v1558_v1, %v1440_v58  ;;  %v1501_v4 = vpop.f32.mrf.mxu0  ;;  %v1560_v5 = vpop.f32.mrf.mxu1 }
 0x216   : > { %v1561_v28 = vadd.f32 %v1560_v5, %v1501_v4 }
 0x217   : > { %2042 = vmatmul.bf16.gmra.mxu2 %v1807_v6  ;;  %2101 = vmatmul.bf16.gmra.mxu3 %v1808_v7  ;;  %v1641_v9 = vunpack.c.l.bf16 %v1588_v3  ;;  %v1642_v10 = vunpack.c.h.bf16 %v1588_v3 }
 0x218   : > { %2160 = vmatmul.bf16.gmra.mxu0 %v1807_v6  ;;  %2219 = vmatmul.bf16.gmra.mxu1 %v1808_v7  ;;  %v2271_v6 = vpack.c.bf16 %v2268_v0, %v2267_v63 }
 0x219   : > { %v1683_v17 = vadd.f32 %v3999_v31, %v1641_v9  ;;  %v1684_v18 = vadd.f32 %v4001_v32, %v1642_v10 }
 0x21a   : > { %v1383_v11 = vpop.f32.mrf.mxu2  ;;  %v1442_v12 = vpop.f32.mrf.mxu3  ;;  %v2273_v13 = vunpack.c.l.b16 %v2271_v6 }
 0x21b   : > { %v1783_v20 = vmax.f32 %v1683_v17, 0.0  ;;  %v1784_v38 = vmax.f32 %v1684_v18, 0.0  ;;  %v1443_v21 = vadd.f32 %v1442_v12, %v1383_v11  ;;  %v2274_v18 = vunpack.c.h.b16 %v2271_v6 }
 0x21d   : > { %v1503_v15 = vpop.f32.mrf.mxu0  ;;  %v1562_v16 = vpop.f32.mrf.mxu1  ;;  %v1809_v34 = vpack.c.bf16 %v1783_v20, %v1781_v26  ;;  %v1810_v35 = vpack.c.bf16 %v1784_v38, %v1782_v27  ;;  %v1589_v39 = vpack.c.bf16 %v1561_v28, %v1443_v21  ;;  %v2275_v20 = vpack.c.b16 %v2273_v13, %v2273_v13 }
 0x21e   : > { %v1563_v24 = vadd.f32 %v1562_v16, %v1503_v15 }
 0x21f   : > { %v1643_v42 = vunpack.c.l.bf16 %v1589_v39  ;;  %v1644_v45 = vunpack.c.h.bf16 %v1589_v39 }
 0x221   : > { %v1685_v50 = vadd.f32 %v3999_v31, %v1643_v42  ;;  %v1686_v51 = vadd.f32 %v4001_v32, %v1644_v45 }
 0x222   : > { %v1385_v22 = vpop.f32.mrf.mxu2  ;;  %v1444_v23 = vpop.f32.mrf.mxu3 }
 0x223   : > { %v1445_v25 = vadd.f32 %v1444_v23, %v1385_v22  ;;  %v1785_v56 = vmax.f32 %v1685_v50, 0.0  ;;  %v1786_v62 = vmax.f32 %v1686_v51, 0.0  ;;  %v2276_v22 = vpack.c.b16 %v2274_v18, %v2274_v18 }
 0x225   : > { %v1590_v29 = vpack.c.bf16 %v1563_v24, %v1445_v25  ;;  %v1506_v30 = vpop.f32.mrf.mxu0  ;;  %v1565_v33 = vpop.f32.mrf.mxu1  ;;  %v2282_v42 = vpack.i.b16 %v2276_v22, %v2276_v22 }
 0x226   : > { %v1566_v1 = vadd.f32 %v1565_v33, %v1506_v30  ;;  %v2278_v33 = vpack.i.b16 %v2275_v20, %v2275_v20 }
 0x227   : > { %2047 = vmatmul.bf16.gmra.mxu2 %v1809_v34  ;;  %2106 = vmatmul.bf16.gmra.mxu3 %v1810_v35  ;;  %v1645_v40 = vunpack.c.l.bf16 %v1590_v29  ;;  %v1646_v41 = vunpack.c.h.bf16 %v1590_v29 }
 0x228   : > { %2165 = vmatmul.bf16.gmra.mxu0 %v1809_v34  ;;  %2224 = vmatmul.bf16.gmra.mxu1 %v1810_v35 }
 0x229   : > { %v1687_v48 = vadd.f32 %v3999_v31, %v1645_v40  ;;  %v1688_v49 = vadd.f32 %v4001_v32, %v1646_v41 }
 0x22a   : > { %v1388_v43 = vpop.f32.mrf.mxu2  ;;  %v1447_v44 = vpop.f32.mrf.mxu3 }
 0x22b   : > { %v1787_v36 = vmax.f32 %v1687_v48, 0.0  ;;  %v1788_v52 = vmax.f32 %v1688_v49, 0.0  ;;  %v1448_v57 = vadd.f32 %v1447_v44, %v1388_v43  ;;  %v2280_v44 = vperm.slane %v2278_v33, 0 }
 0x22d   : > { %v1508_v46 = vpop.f32.mrf.mxu0  ;;  %v1567_v47 = vpop.f32.mrf.mxu1  ;;  %v1811_v3 = vpack.c.bf16 %v1787_v36, %v1785_v56  ;;  %v1812_v4 = vpack.c.bf16 %v1788_v52, %v1786_v62  ;;  %v1591_v5 = vpack.c.bf16 %v1566_v1, %v1448_v57  ;;  %v4042_v53 = vunpack.c.l.bf16 %v2280_v44 }
 0x22e   : > { %v1568_v60 = vadd.f32 %v1567_v47, %v1508_v46  ;;  %v2284_v47 = vperm.slane %v2282_v42, 0 }
 0x22f   : > { %v1647_v11 = vunpack.c.l.bf16 %v1591_v5  ;;  %v1648_v12 = vunpack.c.h.bf16 %v1591_v5 }
 0x231   : > { %v1689_v19 = vadd.f32 %v3999_v31, %v1647_v11  ;;  %v1690_v37 = vadd.f32 %v4001_v32, %v1648_v12 }
 0x232   : > { %v1390_v54 = vpop.f32.mrf.mxu2  ;;  %v1449_v55 = vpop.f32.mrf.mxu3 }
 0x233   : > { %v1450_v61 = vadd.f32 %v1449_v55, %v1390_v54  ;;  %v1789_v28 = vmax.f32 %v1689_v19, 0.0  ;;  %v1790_v29 = vmax.f32 %v1690_v37, 0.0  ;;  %v4044_v55 = vunpack.c.l.bf16 %v2284_v47 }
 0x235   : > { %v1592_v58 = vpack.c.bf16 %v1568_v60, %v1450_v61  ;;  %v1511_v59 = vpop.f32.mrf.mxu0  ;;  %v1570_v2 = vpop.f32.mrf.mxu1 }
 0x236   : > { %v1571_v30 = vadd.f32 %v1570_v2, %v1511_v59 }
 0x237   : > { %2052 = vmatmul.bf16.gmra.mxu2 %v1811_v3  ;;  %2111 = vmatmul.bf16.gmra.mxu3 %v1812_v4  ;;  %v1649_v7 = vunpack.c.l.bf16 %v1592_v58  ;;  %v1650_v8 = vunpack.c.h.bf16 %v1592_v58 }
 0x238   : > { %2170 = vmatmul.bf16.gmra.mxu0 %v1811_v3  ;;  %2229 = vmatmul.bf16.gmra.mxu1 %v1812_v4  ;;  %v2487_v4 = vld [vmem:[%s4216_s8] sm:$0x3] }
 0x239   : > { %v1691_v16 = vadd.f32 %v3999_v31, %v1649_v7  ;;  %v1692_v17 = vadd.f32 %v4001_v32, %v1650_v8  ;;  %v4055_v11 = vperm.slane %v2487_v4, 0  ;;  %v4057_v12 = vperm.slane %v2487_v4, 1 }
 0x23a   : > { %v1393_v9 = vpop.f32.mrf.mxu2  ;;  %v1452_v10 = vpop.f32.mrf.mxu3 }
 0x23b   : > { %v1791_v38 = vmax.f32 %v1691_v16, 0.0  ;;  %v1792_v21 = vmax.f32 %v1692_v17, 0.0  ;;  %v1453_v23 = vadd.f32 %v1452_v10, %v1393_v9 }
 0x23d   : > { %v1513_v14 = vpop.f32.mrf.mxu0  ;;  %v1572_v15 = vpop.f32.mrf.mxu1  ;;  %v1813_v40 = vpack.c.bf16 %v1791_v38, %v1789_v28  ;;  %v1814_v41 = vpack.c.bf16 %v1792_v21, %v1790_v29  ;;  %v1593_v43 = vpack.c.bf16 %v1571_v30, %v1453_v23 }
 0x23e   : > { %v1573_v26 = vadd.f32 %v1572_v15, %v1513_v14 }
 0x23f   : > { %v1651_v48 = vunpack.c.l.bf16 %v1593_v43  ;;  %v1652_v49 = vunpack.c.h.bf16 %v1593_v43 }
 0x241   : > { %v1693_v62 = vadd.f32 %v3999_v31, %v1651_v48  ;;  %v1694_v63 = vadd.f32 %v4001_v32, %v1652_v49 }
 0x242   : > { %v1395_v24 = vpop.f32.mrf.mxu2  ;;  %v1454_v25 = vpop.f32.mrf.mxu3 }
 0x243   : > { %v1455_v27 = vadd.f32 %v1454_v25, %v1395_v24  ;;  %v1793_v7 = vmax.f32 %v1693_v62, 0.0  ;;  %v1794_v8 = vmax.f32 %v1694_v63, 0.0 }
 0x245   : > { %v1594_v34 = vpack.c.bf16 %v1573_v26, %v1455_v27  ;;  %v2136_v35 = vpop.f32.mrf.mxu0  ;;  %v2195_v39 = vpop.f32.mrf.mxu1 }
 0x246   : > { %v2196_v36 = vadd.f32 %v2195_v39, %v2136_v35 }
 0x247   : > { %2057 = vmatmul.bf16.gmra.mxu2 %v1813_v40  ;;  %2116 = vmatmul.bf16.gmra.mxu3 %v1814_v41  ;;  %v1653_v45 = vunpack.c.l.bf16 %v1594_v34  ;;  %v1654_v46 = vunpack.c.h.bf16 %v1594_v34 }
 0x248   : > { %2175 = vmatmul.bf16.gmra.mxu0 %v1813_v40  ;;  %2234 = vmatmul.bf16.gmra.mxu1 %v1814_v41 }
 0x249   : > { %v1695_v60 = vadd.f32 %v3999_v31, %v1653_v45  ;;  %v1696_v61 = vadd.f32 %v4001_v32, %v1654_v46 }
 0x24a   : > { %v2018_v50 = vpop.f32.mrf.mxu2  ;;  %v2077_v51 = vpop.f32.mrf.mxu3 }
 0x24b   : > { %v2078_v52 = vadd.f32 %v2077_v51, %v2018_v50  ;;  %v1795_v2 = vmax.f32 %v1695_v60, 0.0  ;;  %v1796_v3 = vmax.f32 %v1696_v61, 0.0 }
 0x24d   : > { %v2245_v54 = vpack.c.bf16 %v2196_v36, %v2078_v52  ;;  %v2138_v56 = vpop.f32.mrf.mxu0  ;;  %v2197_v57 = vpop.f32.mrf.mxu1  ;;  %v1815_v16 = vpack.c.bf16 %v1795_v2, %v1793_v7  ;;  %v1816_v17 = vpack.c.bf16 %v1796_v3, %v1794_v8 }
 0x24e   : > { %v2198_v10 = vadd.f32 %v2197_v57, %v2138_v56 }
 0x24f   : > { %v2285_v0 = vunpack.c.l.bf16 %v2245_v54  ;;  %v2286_v1 = vunpack.c.h.bf16 %v2245_v54 }
 0x251   : > { %v2327_v58 = vadd.f32 %v4042_v53, %v2285_v0  ;;  %v2328_v59 = vadd.f32 %v4044_v55, %v2286_v1 }
 0x252   : > { %v2020_v5 = vpop.f32.mrf.mxu2  ;;  %v2079_v6 = vpop.f32.mrf.mxu3 }
 0x253   : > { %v2427_v9 = vmax.f32 %v2327_v58, 0.0  ;;  %v2428_v31 = vmax.f32 %v2328_v59, 0.0  ;;  %v2080_v32 = vadd.f32 %v2079_v6, %v2020_v5 }
 0x255   : > { %v2246_v13 = vpack.c.bf16 %v2198_v10, %v2080_v32  ;;  %v2141_v14 = vpop.f32.mrf.mxu0  ;;  %v2200_v15 = vpop.f32.mrf.mxu1  ;;  %v2467_v18 = vpack.c.bf16 %v2428_v31, %v2427_v9 }
 0x256   : > { %v2201_v25 = vadd.f32 %v2200_v15, %v2141_v14 }
 0x257   : > { %v2287_v19 = vunpack.c.l.bf16 %v2246_v13  ;;  %v2288_v37 = vunpack.c.h.bf16 %v2246_v13  ;;  %2062 = vmatmul.bf16.gmra.mxu2 %v1815_v16  ;;  %2121 = vmatmul.bf16.gmra.mxu3 %v1816_v17  ;;  %v2488_v20 = vunpack.c.l.bf16 %v2467_v18  ;;  %v2489_v38 = vunpack.c.h.bf16 %v2467_v18 }
 0x258   : > { %2180 = vmatmul.bf16.gmra.mxu0 %v1815_v16  ;;  %2239 = vmatmul.bf16.gmra.mxu1 %v1816_v17 }
 0x259   : > { %v2329_v21 = vadd.f32 %v4042_v53, %v2287_v19  ;;  %v2330_v22 = vadd.f32 %v4044_v55, %v2288_v37  ;;  %v2533_v23 = vmul.f32 %v4055_v11, %v2488_v20  ;;  %v2534_v24 = vmul.f32 %v4057_v12, %v2489_v38 }
 0x25a   : > { %v2023_v26 = vpop.f32.mrf.mxu2  ;;  %v2082_v27 = vpop.f32.mrf.mxu3 }
 0x25b   : > { %v2429_v28 = vmax.f32 %v2329_v21, 0.0  ;;  %v2430_v29 = vmax.f32 %v2330_v22, 0.0  ;;  %v2083_v30 = vadd.f32 %v2082_v27, %v2023_v26  ;;  %v2573_v33 = vadd.f32 %v2534_v24, %v2533_v23 }
 0x25d   : > { %v2247_v34 = vpack.c.bf16 %v2201_v25, %v2083_v30  ;;  %v2143_v35 = vpop.f32.mrf.mxu0  ;;  %v2202_v39 = vpop.f32.mrf.mxu1  ;;  %2574 = vadd.xlane.f32.xlu2 %v2573_v33  ;;  %v2468_v40 = vpack.c.bf16 %v2430_v29, %v2429_v28 }
 0x25e   : > { %v2203_v49 = vadd.f32 %v2202_v39, %v2143_v35 }
 0x25f   : > { %v2289_v41 = vunpack.c.l.bf16 %v2247_v34  ;;  %v2290_v42 = vunpack.c.h.bf16 %v2247_v34  ;;  %v2490_v43 = vunpack.c.l.bf16 %v2468_v40  ;;  %v2491_v44 = vunpack.c.h.bf16 %v2468_v40 }
 0x261   : > { %v2331_v45 = vadd.f32 %v4042_v53, %v2289_v41  ;;  %v2332_v46 = vadd.f32 %v4044_v55, %v2290_v42  ;;  %v2535_v47 = vmul.f32 %v4055_v11, %v2490_v43  ;;  %v2536_v48 = vmul.f32 %v4057_v12, %v2491_v44 }
 0x262   : > { %v2025_v50 = vpop.f32.mrf.mxu2  ;;  %v2084_v51 = vpop.f32.mrf.mxu3 }
 0x263   : > { %v2431_v36 = vmax.f32 %v2331_v45, 0.0  ;;  %v2432_v52 = vmax.f32 %v2332_v46, 0.0  ;;  %v2085_v54 = vadd.f32 %v2084_v51, %v2025_v50  ;;  %v2576_v56 = vadd.f32 %v2536_v48, %v2535_v47 }
 0x265   : > { %v2248_v57 = vpack.c.bf16 %v2203_v49, %v2085_v54  ;;  %v2146_v60 = vpop.f32.mrf.mxu0  ;;  %v2205_v61 = vpop.f32.mrf.mxu1  ;;  %2577 = vadd.xlane.f32.xlu0 %v2576_v56  ;;  %v2469_v62 = vpack.c.bf16 %v2432_v52, %v2431_v36 }
 0x266   : > { %v2206_v5 = vadd.f32 %v2205_v61, %v2146_v60 }
 0x267   : > { %v2291_v63 = vunpack.c.l.bf16 %v2248_v57  ;;  %v2292_v0 = vunpack.c.h.bf16 %v2248_v57  ;;  %v2492_v1 = vunpack.c.l.bf16 %v2469_v62  ;;  %v2493_v58 = vunpack.c.h.bf16 %v2469_v62 }
 0x269   : > { %v2333_v59 = vadd.f32 %v4042_v53, %v2291_v63  ;;  %v2334_v2 = vadd.f32 %v4044_v55, %v2292_v0  ;;  %v2537_v3 = vmul.f32 %v4055_v11, %v2492_v1  ;;  %v2538_v4 = vmul.f32 %v4057_v12, %v2493_v58 }
 0x26a   : > { %v2028_v6 = vpop.f32.mrf.mxu2  ;;  %v2087_v7 = vpop.f32.mrf.mxu3 }
 0x26b   : > { %v2433_v8 = vmax.f32 %v2333_v59, 0.0  ;;  %v2434_v9 = vmax.f32 %v2334_v2, 0.0  ;;  %v2088_v31 = vadd.f32 %v2087_v7, %v2028_v6  ;;  %v2579_v10 = vadd.f32 %v2538_v4, %v2537_v3 }
 0x26d   : > { %v2249_v32 = vpack.c.bf16 %v2206_v5, %v2088_v31  ;;  %v2148_v13 = vpop.f32.mrf.mxu0  ;;  %v2207_v14 = vpop.f32.mrf.mxu1  ;;  %2580 = vadd.xlane.f32.xlu1 %v2579_v10  ;;  %v2470_v15 = vpack.c.bf16 %v2434_v9, %v2433_v8 }
 0x26e   : > { %v2208_v22 = vadd.f32 %v2207_v14, %v2148_v13 }
 0x26f   : > { %v2293_v16 = vunpack.c.l.bf16 %v2249_v32  ;;  %v2294_v17 = vunpack.c.h.bf16 %v2249_v32  ;;  %v2494_v18 = vunpack.c.l.bf16 %v2470_v15  ;;  %v2495_v19 = vunpack.c.h.bf16 %v2470_v15 }
 0x271   : > { %v2335_v37 = vadd.f32 %v4042_v53, %v2293_v16  ;;  %v2336_v20 = vadd.f32 %v4044_v55, %v2294_v17  ;;  %v2539_v38 = vmul.f32 %v4055_v11, %v2494_v18  ;;  %v2540_v21 = vmul.f32 %v4057_v12, %v2495_v19 }
 0x272   : > { %v2030_v23 = vpop.f32.mrf.mxu2  ;;  %v2089_v24 = vpop.f32.mrf.mxu3 }
 0x273   : > { %v2435_v25 = vmax.f32 %v2335_v37, 0.0  ;;  %v2436_v26 = vmax.f32 %v2336_v20, 0.0  ;;  %v2090_v27 = vadd.f32 %v2089_v24, %v2030_v23  ;;  %v2582_v28 = vadd.f32 %v2540_v21, %v2539_v38 }
 0x275   : > { %v2250_v29 = vpack.c.bf16 %v2208_v22, %v2090_v27  ;;  %v2151_v30 = vpop.f32.mrf.mxu0  ;;  %v2210_v33 = vpop.f32.mrf.mxu1  ;;  %2583 = vadd.xlane.f32.xlu2 %v2582_v28  ;;  %v2471_v34 = vpack.c.bf16 %v2436_v26, %v2435_v25 }
 0x276   : > { %v2211_v46 = vadd.f32 %v2210_v33, %v2151_v30 }
 0x277   : > { %v2295_v35 = vunpack.c.l.bf16 %v2250_v29  ;;  %v2296_v39 = vunpack.c.h.bf16 %v2250_v29  ;;  %v2496_v40 = vunpack.c.l.bf16 %v2471_v34  ;;  %v2497_v41 = vunpack.c.h.bf16 %v2471_v34 }
 0x279   : > { %v2337_v42 = vadd.f32 %v4042_v53, %v2295_v35  ;;  %v2338_v43 = vadd.f32 %v4044_v55, %v2296_v39  ;;  %v2541_v44 = vmul.f32 %v4055_v11, %v2496_v40  ;;  %v2542_v45 = vmul.f32 %v4057_v12, %v2497_v41 }
 0x27a   : > { %v2033_v47 = vpop.f32.mrf.mxu2  ;;  %v2092_v48 = vpop.f32.mrf.mxu3 }
 0x27b   : > { %v2437_v49 = vmax.f32 %v2337_v42, 0.0  ;;  %v2438_v50 = vmax.f32 %v2338_v43, 0.0  ;;  %v2093_v51 = vadd.f32 %v2092_v48, %v2033_v47  ;;  %v2585_v36 = vadd.f32 %v2542_v45, %v2541_v44 }
 0x27d   : > { %v2251_v52 = vpack.c.bf16 %v2211_v46, %v2093_v51  ;;  %v2153_v54 = vpop.f32.mrf.mxu0  ;;  %v2212_v56 = vpop.f32.mrf.mxu1  ;;  %2586 = vadd.xlane.f32.xlu2 %v2585_v36  ;;  %v2472_v57 = vpack.c.bf16 %v2438_v50, %v2437_v49 }
 0x27e   : > { %v2213_v2 = vadd.f32 %v2212_v56, %v2153_v54 }
 0x27f   : > { %v2297_v60 = vunpack.c.l.bf16 %v2251_v52  ;;  %v2298_v61 = vunpack.c.h.bf16 %v2251_v52  ;;  %v2498_v62 = vunpack.c.l.bf16 %v2472_v57  ;;  %v2499_v63 = vunpack.c.h.bf16 %v2472_v57 }
 0x281   : > { %v2339_v0 = vadd.f32 %v4042_v53, %v2297_v60  ;;  %v2340_v1 = vadd.f32 %v4044_v55, %v2298_v61  ;;  %v2543_v58 = vmul.f32 %v4055_v11, %v2498_v62  ;;  %v2544_v59 = vmul.f32 %v4057_v12, %v2499_v63 }
 0x282   : > { %v2035_v3 = vpop.f32.mrf.mxu2  ;;  %v2094_v4 = vpop.f32.mrf.mxu3 }
 0x283   : > { %v2439_v5 = vmax.f32 %v2339_v0, 0.0  ;;  %v2440_v6 = vmax.f32 %v2340_v1, 0.0  ;;  %v2095_v7 = vadd.f32 %v2094_v4, %v2035_v3  ;;  %v2588_v8 = vadd.f32 %v2544_v59, %v2543_v58 }
 0x285   : > { %v2252_v9 = vpack.c.bf16 %v2213_v2, %v2095_v7  ;;  %v2156_v31 = vpop.f32.mrf.mxu0  ;;  %v2215_v10 = vpop.f32.mrf.mxu1  ;;  %2589 = vadd.xlane.f32.xlu0 %v2588_v8  ;;  %v2473_v32 = vpack.c.bf16 %v2440_v6, %v2439_v5 }
 0x286   : > { %v2216_v20 = vadd.f32 %v2215_v10, %v2156_v31 }
 0x287   : > { %v2299_v13 = vunpack.c.l.bf16 %v2252_v9  ;;  %v2300_v14 = vunpack.c.h.bf16 %v2252_v9  ;;  %v2500_v15 = vunpack.c.l.bf16 %v2473_v32  ;;  %v2501_v16 = vunpack.c.h.bf16 %v2473_v32 }
 0x289   : > { %v2341_v17 = vadd.f32 %v4042_v53, %v2299_v13  ;;  %v2342_v18 = vadd.f32 %v4044_v55, %v2300_v14  ;;  %v2545_v19 = vmul.f32 %v4055_v11, %v2500_v15  ;;  %v2546_v37 = vmul.f32 %v4057_v12, %v2501_v16 }
 0x28a   : > { %v2038_v38 = vpop.f32.mrf.mxu2  ;;  %v2097_v21 = vpop.f32.mrf.mxu3 }
 0x28b   : > { %v2441_v22 = vmax.f32 %v2341_v17, 0.0  ;;  %v2442_v23 = vmax.f32 %v2342_v18, 0.0  ;;  %v2098_v24 = vadd.f32 %v2097_v21, %v2038_v38  ;;  %v2591_v25 = vadd.f32 %v2546_v37, %v2545_v19 }
 0x28d   : > { %v2253_v26 = vpack.c.bf16 %v2216_v20, %v2098_v24  ;;  %v2158_v27 = vpop.f32.mrf.mxu0  ;;  %v2217_v28 = vpop.f32.mrf.mxu1  ;;  %2592 = vadd.xlane.f32.xlu1 %v2591_v25  ;;  %v2474_v29 = vpack.c.bf16 %v2442_v23, %v2441_v22 }
 0x28e   : > { %v2218_v43 = vadd.f32 %v2217_v28, %v2158_v27 }
 0x28f   : > { %v2301_v30 = vunpack.c.l.bf16 %v2253_v26  ;;  %v2302_v33 = vunpack.c.h.bf16 %v2253_v26  ;;  %v2502_v34 = vunpack.c.l.bf16 %v2474_v29  ;;  %v2503_v35 = vunpack.c.h.bf16 %v2474_v29 }
 0x291   : > { %v2343_v39 = vadd.f32 %v4042_v53, %v2301_v30  ;;  %v2344_v40 = vadd.f32 %v4044_v55, %v2302_v33  ;;  %v2547_v41 = vmul.f32 %v4055_v11, %v2502_v34  ;;  %v2548_v42 = vmul.f32 %v4057_v12, %v2503_v35 }
 0x292   : > { %v2040_v44 = vpop.f32.mrf.mxu2  ;;  %v2099_v45 = vpop.f32.mrf.mxu3 }
 0x293   : > { %v2443_v46 = vmax.f32 %v2343_v39, 0.0  ;;  %v2444_v47 = vmax.f32 %v2344_v40, 0.0  ;;  %v2100_v48 = vadd.f32 %v2099_v45, %v2040_v44  ;;  %v2594_v49 = vadd.f32 %v2548_v42, %v2547_v41 }
 0x295   : > { %v2254_v50 = vpack.c.bf16 %v2218_v43, %v2100_v48  ;;  %v2161_v51 = vpop.f32.mrf.mxu0  ;;  %v2220_v36 = vpop.f32.mrf.mxu1  ;;  %2595 = vadd.xlane.f32.xlu2 %v2594_v49  ;;  %v2475_v52 = vpack.c.bf16 %v2444_v47, %v2443_v46 }
 0x296   : > { %v2221_v1 = vadd.f32 %v2220_v36, %v2161_v51 }
 0x297   : > { %v2303_v54 = vunpack.c.l.bf16 %v2254_v50  ;;  %v2304_v56 = vunpack.c.h.bf16 %v2254_v50  ;;  %v2504_v57 = vunpack.c.l.bf16 %v2475_v52  ;;  %v2505_v60 = vunpack.c.h.bf16 %v2475_v52 }
 0x299   : > { %v2345_v61 = vadd.f32 %v4042_v53, %v2303_v54  ;;  %v2346_v62 = vadd.f32 %v4044_v55, %v2304_v56  ;;  %v2549_v63 = vmul.f32 %v4055_v11, %v2504_v57  ;;  %v2550_v0 = vmul.f32 %v4057_v12, %v2505_v60 }
 0x29a   : > { %v2043_v58 = vpop.f32.mrf.mxu2  ;;  %v2102_v59 = vpop.f32.mrf.mxu3 }
 0x29b   : > { %v2445_v2 = vmax.f32 %v2345_v61, 0.0  ;;  %v2446_v3 = vmax.f32 %v2346_v62, 0.0  ;;  %v2103_v4 = vadd.f32 %v2102_v59, %v2043_v58  ;;  %v2597_v5 = vadd.f32 %v2550_v0, %v2549_v63 }
 0x29d   : > { %v2255_v6 = vpack.c.bf16 %v2221_v1, %v2103_v4  ;;  %v2163_v7 = vpop.f32.mrf.mxu0  ;;  %v2222_v8 = vpop.f32.mrf.mxu1  ;;  %2598 = vadd.xlane.f32.xlu0 %v2597_v5  ;;  %v2476_v9 = vpack.c.bf16 %v2446_v3, %v2445_v2 }
 0x29e   : > { %v2223_v18 = vadd.f32 %v2222_v8, %v2163_v7 }
 0x29f   : > { %v2305_v31 = vunpack.c.l.bf16 %v2255_v6  ;;  %v2306_v10 = vunpack.c.h.bf16 %v2255_v6  ;;  %v2506_v32 = vunpack.c.l.bf16 %v2476_v9  ;;  %v2507_v13 = vunpack.c.h.bf16 %v2476_v9 }
 0x2a1   : > { %v2347_v14 = vadd.f32 %v4042_v53, %v2305_v31  ;;  %v2348_v15 = vadd.f32 %v4044_v55, %v2306_v10  ;;  %v2551_v16 = vmul.f32 %v4055_v11, %v2506_v32  ;;  %v2552_v17 = vmul.f32 %v4057_v12, %v2507_v13 }
 0x2a2   : > { %v2045_v19 = vpop.f32.mrf.mxu2  ;;  %v2104_v37 = vpop.f32.mrf.mxu3 }
 0x2a3   : > { %v2447_v20 = vmax.f32 %v2347_v14, 0.0  ;;  %v2448_v38 = vmax.f32 %v2348_v15, 0.0  ;;  %v2105_v21 = vadd.f32 %v2104_v37, %v2045_v19  ;;  %v2600_v22 = vadd.f32 %v2552_v17, %v2551_v16 }
 0x2a5   : > { %v2256_v23 = vpack.c.bf16 %v2223_v18, %v2105_v21  ;;  %v2166_v24 = vpop.f32.mrf.mxu0  ;;  %v2225_v25 = vpop.f32.mrf.mxu1  ;;  %2601 = vadd.xlane.f32.xlu1 %v2600_v22  ;;  %v2477_v26 = vpack.c.bf16 %v2448_v38, %v2447_v20 }
 0x2a6   : > { %v2226_v40 = vadd.f32 %v2225_v25, %v2166_v24 }
 0x2a7   : > { %v2307_v27 = vunpack.c.l.bf16 %v2256_v23  ;;  %v2308_v28 = vunpack.c.h.bf16 %v2256_v23  ;;  %v2508_v29 = vunpack.c.l.bf16 %v2477_v26  ;;  %v2509_v30 = vunpack.c.h.bf16 %v2477_v26 }
 0x2a9   : > { %v2349_v33 = vadd.f32 %v4042_v53, %v2307_v27  ;;  %v2350_v34 = vadd.f32 %v4044_v55, %v2308_v28  ;;  %v2553_v35 = vmul.f32 %v4055_v11, %v2508_v29  ;;  %v2554_v39 = vmul.f32 %v4057_v12, %v2509_v30 }
 0x2aa   : > { %v2048_v41 = vpop.f32.mrf.mxu2  ;;  %v2107_v42 = vpop.f32.mrf.mxu3 }
 0x2ab   : > { %v2449_v43 = vmax.f32 %v2349_v33, 0.0  ;;  %v2450_v44 = vmax.f32 %v2350_v34, 0.0  ;;  %v2108_v45 = vadd.f32 %v2107_v42, %v2048_v41  ;;  %v2603_v46 = vadd.f32 %v2554_v39, %v2553_v35 }
 0x2ad   : > { %v2257_v47 = vpack.c.bf16 %v2226_v40, %v2108_v45  ;;  %v2168_v48 = vpop.f32.mrf.mxu0  ;;  %v2227_v49 = vpop.f32.mrf.mxu1  ;;  %2604 = vadd.xlane.f32.xlu2 %v2603_v46  ;;  %v2478_v50 = vpack.c.bf16 %v2450_v44, %v2449_v43 }
 0x2ae   : > { %v2228_v62 = vadd.f32 %v2227_v49, %v2168_v48 }
 0x2af   : > { %v2309_v51 = vunpack.c.l.bf16 %v2257_v47  ;;  %v2310_v36 = vunpack.c.h.bf16 %v2257_v47  ;;  %v2510_v52 = vunpack.c.l.bf16 %v2478_v50  ;;  %v2511_v54 = vunpack.c.h.bf16 %v2478_v50 }
 0x2b1   : > { %v2351_v56 = vadd.f32 %v4042_v53, %v2309_v51  ;;  %v2352_v57 = vadd.f32 %v4044_v55, %v2310_v36  ;;  %v2555_v60 = vmul.f32 %v4055_v11, %v2510_v52  ;;  %v2556_v61 = vmul.f32 %v4057_v12, %v2511_v54 }
 0x2b2   : > { %v2050_v63 = vpop.f32.mrf.mxu2  ;;  %v2109_v0 = vpop.f32.mrf.mxu3 }
 0x2b3   : > { %v2451_v1 = vmax.f32 %v2351_v56, 0.0  ;;  %v2452_v58 = vmax.f32 %v2352_v57, 0.0  ;;  %v2110_v59 = vadd.f32 %v2109_v0, %v2050_v63  ;;  %v2606_v2 = vadd.f32 %v2556_v61, %v2555_v60 }
 0x2b5   : > { %v2258_v3 = vpack.c.bf16 %v2228_v62, %v2110_v59  ;;  %v2171_v4 = vpop.f32.mrf.mxu0  ;;  %v2230_v5 = vpop.f32.mrf.mxu1  ;;  %2607 = vadd.xlane.f32.xlu0 %v2606_v2  ;;  %v2479_v6 = vpack.c.bf16 %v2452_v58, %v2451_v1 }
 0x2b6   : > { %v2231_v15 = vadd.f32 %v2230_v5, %v2171_v4 }
 0x2b7   : > { %v2311_v7 = vunpack.c.l.bf16 %v2258_v3  ;;  %v2312_v8 = vunpack.c.h.bf16 %v2258_v3  ;;  %v2512_v9 = vunpack.c.l.bf16 %v2479_v6  ;;  %v2513_v31 = vunpack.c.h.bf16 %v2479_v6  ;;  %v4119_v3 = vld [vmem:[#allocation3] ss:$0 sm:$0xff] }
 0x2b9   : > { %v2353_v10 = vadd.f32 %v4042_v53, %v2311_v7  ;;  %v2354_v32 = vadd.f32 %v4044_v55, %v2312_v8  ;;  %v2557_v13 = vmul.f32 %v4055_v11, %v2512_v9  ;;  %v2558_v14 = vmul.f32 %v4057_v12, %v2513_v31 }
 0x2ba   : > { %v2053_v16 = vpop.f32.mrf.mxu2  ;;  %v2112_v17 = vpop.f32.mrf.mxu3 }
 0x2bb   : > { %v2453_v18 = vmax.f32 %v2353_v10, 0.0  ;;  %v2454_v19 = vmax.f32 %v2354_v32, 0.0  ;;  %v2113_v37 = vadd.f32 %v2112_v17, %v2053_v16  ;;  %v2609_v20 = vadd.f32 %v2558_v14, %v2557_v13 }
 0x2bd   : > { %v2259_v38 = vpack.c.bf16 %v2231_v15, %v2113_v37  ;;  %v2173_v21 = vpop.f32.mrf.mxu0  ;;  %v2232_v22 = vpop.f32.mrf.mxu1  ;;  %2610 = vadd.xlane.f32.xlu1 %v2609_v20  ;;  %v2480_v23 = vpack.c.bf16 %v2454_v19, %v2453_v18 }
 0x2be   : > { %v2233_v34 = vadd.f32 %v2232_v22, %v2173_v21 }
 0x2bf   : > { %v2313_v24 = vunpack.c.l.bf16 %v2259_v38  ;;  %v2314_v25 = vunpack.c.h.bf16 %v2259_v38  ;;  %v2514_v26 = vunpack.c.l.bf16 %v2480_v23  ;;  %v2515_v27 = vunpack.c.h.bf16 %v2480_v23 }
 0x2c1   : > { %v2355_v28 = vadd.f32 %v4042_v53, %v2313_v24  ;;  %v2356_v29 = vadd.f32 %v4044_v55, %v2314_v25  ;;  %v2559_v30 = vmul.f32 %v4055_v11, %v2514_v26  ;;  %v2560_v33 = vmul.f32 %v4057_v12, %v2515_v27 }
 0x2c2   : > { %v2055_v35 = vpop.f32.mrf.mxu2  ;;  %v2114_v39 = vpop.f32.mrf.mxu3 }
 0x2c3   : > { %v2455_v40 = vmax.f32 %v2355_v28, 0.0  ;;  %v2456_v41 = vmax.f32 %v2356_v29, 0.0  ;;  %v2115_v42 = vadd.f32 %v2114_v39, %v2055_v35  ;;  %v2612_v43 = vadd.f32 %v2560_v33, %v2559_v30 }
 0x2c5   : > { %v2260_v44 = vpack.c.bf16 %v2233_v34, %v2115_v42  ;;  %v2176_v45 = vpop.f32.mrf.mxu0  ;;  %v2235_v46 = vpop.f32.mrf.mxu1  ;;  %2613 = vadd.xlane.f32.xlu2 %v2612_v43  ;;  %v2481_v47 = vpack.c.bf16 %v2456_v41, %v2455_v40 }
 0x2c6   : > { %v2236_v57 = vadd.f32 %v2235_v46, %v2176_v45 }
 0x2c7   : > { %v2315_v48 = vunpack.c.l.bf16 %v2260_v44  ;;  %v2316_v49 = vunpack.c.h.bf16 %v2260_v44  ;;  %v2516_v50 = vunpack.c.l.bf16 %v2481_v47  ;;  %v2517_v51 = vunpack.c.h.bf16 %v2481_v47 }
 0x2c9   : > { %v2357_v36 = vadd.f32 %v4042_v53, %v2315_v48  ;;  %v2358_v52 = vadd.f32 %v4044_v55, %v2316_v49  ;;  %v2561_v54 = vmul.f32 %v4055_v11, %v2516_v50  ;;  %v2562_v56 = vmul.f32 %v4057_v12, %v2517_v51 }
 0x2ca   : > { %v2058_v60 = vpop.f32.mrf.mxu2  ;;  %v2117_v61 = vpop.f32.mrf.mxu3 }
 0x2cb   : > { %v2457_v62 = vmax.f32 %v2357_v36, 0.0  ;;  %v2458_v63 = vmax.f32 %v2358_v52, 0.0  ;;  %v2118_v0 = vadd.f32 %v2117_v61, %v2058_v60  ;;  %v2615_v1 = vadd.f32 %v2562_v56, %v2561_v54 }
 0x2cd   : > { %v2261_v58 = vpack.c.bf16 %v2236_v57, %v2118_v0  ;;  %v2178_v59 = vpop.f32.mrf.mxu0  ;;  %v2237_v2 = vpop.f32.mrf.mxu1  ;;  %2616 = vadd.xlane.f32.xlu0 %v2615_v1  ;;  %v2482_v4 = vpack.c.bf16 %v2458_v63, %v2457_v62 }
 0x2ce   : > { %v2238_v19 = vadd.f32 %v2237_v2, %v2178_v59 }
 0x2cf   : > { %v2317_v5 = vunpack.c.l.bf16 %v2261_v58  ;;  %v2318_v6 = vunpack.c.h.bf16 %v2261_v58  ;;  %v2518_v7 = vunpack.c.l.bf16 %v2482_v4  ;;  %v2519_v8 = vunpack.c.h.bf16 %v2482_v4 }
 0x2d0   : > { %v2575_v9 = vpop.xlane.xlu2 %2574 }
 0x2d1   : > { %v2359_v31 = vadd.f32 %v4042_v53, %v2317_v5  ;;  %v2360_v10 = vadd.f32 %v4044_v55, %v2318_v6  ;;  %v2637_v32 = vadd.f32 %v4119_v3, %v2575_v9  ;;  %v2563_v13 = vmul.f32 %v4055_v11, %v2518_v7 }
 0x2d2   : > { %v2060_v14 = vpop.f32.mrf.mxu2  ;;  %v2119_v15 = vpop.f32.mrf.mxu3  ;;  %v2564_v16 = vmul.f32 %v4057_v12, %v2519_v8 }
 0x2d3   : > { %v2459_v17 = vmax.f32 %v2359_v31, 0.0  ;;  %v2460_v18 = vmax.f32 %v2360_v10, 0.0  ;;  %2658 = vst.msk [vmem:[%s4125_s11] sm:$0xff] %vm2657_vm3, %v2637_v32  ;;  %v2120_v37 = vadd.f32 %v2119_v15, %v2060_v14 }
 0x2d4   : > { %v2618_v20 = vadd.f32 %v2564_v16, %v2563_v13 }
 0x2d5   : > { %v2262_v38 = vpack.c.bf16 %v2238_v19, %v2120_v37  ;;  %v2181_v21 = vpop.f32.mrf.mxu0  ;;  %v2483_v22 = vpack.c.bf16 %v2460_v18, %v2459_v17  ;;  %v2240_v23 = vpop.f32.mrf.mxu1 }
 0x2d6   : > { %2619 = vadd.xlane.f32.xlu1 %v2618_v20  ;;  %v2241_v43 = vadd.f32 %v2240_v23, %v2181_v21 }
 0x2d7   : > { %v2319_v24 = vunpack.c.l.bf16 %v2262_v38  ;;  %v2320_v25 = vunpack.c.h.bf16 %v2262_v38  ;;  %v2520_v26 = vunpack.c.l.bf16 %v2483_v22  ;;  %v2521_v27 = vunpack.c.h.bf16 %v2483_v22 }
 0x2d8   : > { %v2578_v28 = vpop.xlane.xlu0 %2577 }
 0x2d9   : > { %v2361_v29 = vadd.f32 %v4042_v53, %v2319_v24  ;;  %v2362_v30 = vadd.f32 %v4044_v55, %v2320_v25  ;;  %v2638_v33 = vadd.f32 %v4119_v3, %v2578_v28  ;;  %v2565_v34 = vmul.f32 %v4055_v11, %v2520_v26 }
 0x2da   : > { %v2063_v35 = vpop.f32.mrf.mxu2  ;;  %v2122_v39 = vpop.f32.mrf.mxu3  ;;  %v2566_v40 = vmul.f32 %v4057_v12, %v2521_v27 }
 0x2db   : > { %v2461_v41 = vmax.f32 %v2361_v29, 0.0  ;;  %v2462_v42 = vmax.f32 %v2362_v30, 0.0  ;;  %2659 = vst.msk [vmem:[%s4125_s11 + $0x8] sm:$0xff] %vm2657_vm3, %v2638_v33  ;;  %v2123_v44 = vadd.f32 %v2122_v39, %v2063_v35 }
 0x2dc   : > { %v2621_v45 = vadd.f32 %v2566_v40, %v2565_v34 }
 0x2dd   : > { %v2263_v46 = vpack.c.bf16 %v2241_v43, %v2123_v44  ;;  %v2484_v47 = vpack.c.bf16 %v2462_v42, %v2461_v41  ;;  %v2183_v50 = vpop.f32.mrf.mxu0  ;;  %v2242_v52 = vpop.f32.mrf.mxu1 }
 0x2de   : > { %2622 = vadd.xlane.f32.xlu2 %v2621_v45  ;;  %v2243_v59 = vadd.f32 %v2242_v52, %v2183_v50 }
 0x2df   : > { %v2321_v48 = vunpack.c.l.bf16 %v2263_v46  ;;  %v2322_v49 = vunpack.c.h.bf16 %v2263_v46  ;;  %v2522_v51 = vunpack.c.l.bf16 %v2484_v47  ;;  %v2523_v36 = vunpack.c.h.bf16 %v2484_v47 }
 0x2e0   : > { %v2581_v54 = vpop.xlane.xlu1 %2580 }
 0x2e1   : > { %v2363_v56 = vadd.f32 %v4042_v53, %v2321_v48  ;;  %v2364_v57 = vadd.f32 %v4044_v55, %v2322_v49  ;;  %v2639_v60 = vadd.f32 %v4119_v3, %v2581_v54  ;;  %v2567_v61 = vmul.f32 %v4055_v11, %v2522_v51 }
 0x2e2   : > { %v2065_v62 = vpop.f32.mrf.mxu2  ;;  %v2124_v63 = vpop.f32.mrf.mxu3  ;;  %v2568_v0 = vmul.f32 %v4057_v12, %v2523_v36 }
 0x2e3   : > { %v2463_v1 = vmax.f32 %v2363_v56, 0.0  ;;  %v2464_v58 = vmax.f32 %v2364_v57, 0.0  ;;  %2660 = vst.msk [vmem:[%s4125_s11 + $0x10] sm:$0xff] %vm2657_vm3, %v2639_v60  ;;  %v2125_v2 = vadd.f32 %v2124_v63, %v2065_v62 }
 0x2e4   : > { %v2624_v4 = vadd.f32 %v2568_v0, %v2567_v61 }
 0x2e5   : > { %v2264_v5 = vpack.c.bf16 %v2243_v59, %v2125_v2  ;;  %v2485_v6 = vpack.c.bf16 %v2464_v58, %v2463_v1 }
 0x2e6   : > { %2625 = vadd.xlane.f32.xlu0 %v2624_v4 }
 0x2e7   : > { %v2323_v7 = vunpack.c.l.bf16 %v2264_v5  ;;  %v2324_v8 = vunpack.c.h.bf16 %v2264_v5  ;;  %v2524_v9 = vunpack.c.l.bf16 %v2485_v6  ;;  %v2525_v31 = vunpack.c.h.bf16 %v2485_v6 }
 0x2e8   : > { %v2584_v10 = vpop.xlane.xlu2 %2583 }
 0x2e9   : > { %v2365_v32 = vadd.f32 %v4042_v53, %v2323_v7  ;;  %v2366_v13 = vadd.f32 %v4044_v55, %v2324_v8  ;;  %v2640_v14 = vadd.f32 %v4119_v3, %v2584_v10  ;;  %v2569_v15 = vmul.f32 %v4055_v11, %v2524_v9 }
 0x2ea   : > { %v2570_v16 = vmul.f32 %v4057_v12, %v2525_v31 }
 0x2eb   : > { %v2465_v17 = vmax.f32 %v2365_v32, 0.0  ;;  %v2466_v18 = vmax.f32 %v2366_v13, 0.0  ;;  %2661 = vst.msk [vmem:[%s4125_s11 + $0x18] sm:$0xff] %vm2657_vm3, %v2640_v14 }
 0x2ec   : > { %v2627_v19 = vadd.f32 %v2570_v16, %v2569_v15 }
 0x2ed   : > { %v2486_v37 = vpack.c.bf16 %v2466_v18, %v2465_v17 }
 0x2ee   : > { %2628 = vadd.xlane.f32.xlu1 %v2627_v19 }
 0x2ef   : > { %v2526_v20 = vunpack.c.l.bf16 %v2486_v37  ;;  %v2527_v53 = vunpack.c.h.bf16 %v2486_v37 }
 0x2f0   : > { %v2587_v55 = vpop.xlane.xlu2 %2586 }
 0x2f1   : > { %v2641_v38 = vadd.f32 %v4119_v3, %v2587_v55  ;;  %v2571_v21 = vmul.f32 %v4055_v11, %v2526_v20  ;;  %v2572_v22 = vmul.f32 %v4057_v12, %v2527_v53 }
 0x2f3   : > { %2662 = vst.msk [vmem:[%s4125_s11 + $0x20] sm:$0xff] %vm2657_vm3, %v2641_v38  ;;  %v2630_v23 = vadd.f32 %v2572_v22, %v2571_v21 }
 0x2f5   : > { %2631 = vadd.xlane.f32.xlu2 %v2630_v23 }
 0x2f8   : > { %v2590_v24 = vpop.xlane.xlu0 %2589 }
 0x2f9   : > { %v2642_v25 = vadd.f32 %v4119_v3, %v2590_v24 }
 0x2fb   : > { %2663 = vst.msk [vmem:[%s4125_s11 + $0x28] sm:$0xff] %vm2657_vm3, %v2642_v25 }
 0x300   : > { %v2593_v26 = vpop.xlane.xlu1 %2592 }
 0x301   : > { %v2643_v27 = vadd.f32 %v4119_v3, %v2593_v26 }
 0x303   : > { %2664 = vst.msk [vmem:[%s4125_s11 + $0x30] sm:$0xff] %vm2657_vm3, %v2643_v27 }
 0x308   : > { %v2596_v11 = vpop.xlane.xlu2 %2595 }
 0x309   : > { %v2644_v12 = vadd.f32 %v4119_v3, %v2596_v11 }
 0x30b   : > { %2665 = vst.msk [vmem:[%s4125_s11 + $0x38] sm:$0xff] %vm2657_vm3, %v2644_v12 }
 0x310   : > { %v2599_v28 = vpop.xlane.xlu0 %2598 }
 0x311   : > { %v2645_v29 = vadd.f32 %v4119_v3, %v2599_v28 }
 0x313   : > { %2666 = vst.msk [vmem:[%s4125_s11 + $0x40] sm:$0xff] %vm2657_vm3, %v2645_v29 }
 0x318   : > { %v2602_v30 = vpop.xlane.xlu1 %2601 }
 0x319   : > { %v2646_v33 = vadd.f32 %v4119_v3, %v2602_v30 }
 0x31b   : > { %2667 = vst.msk [vmem:[%s4125_s11 + $0x48] sm:$0xff] %vm2657_vm3, %v2646_v33 }
 0x320   : > { %v2605_v34 = vpop.xlane.xlu2 %2604 }
 0x321   : > { %v2647_v35 = vadd.f32 %v4119_v3, %v2605_v34 }
 0x323   : > { %2668 = vst.msk [vmem:[%s4125_s11 + $0x50] sm:$0xff] %vm2657_vm3, %v2647_v35 }
 0x328   : > { %v2608_v39 = vpop.xlane.xlu0 %2607 }
 0x329   : > { %v2648_v40 = vadd.f32 %v4119_v3, %v2608_v39 }
 0x32b   : > { %2669 = vst.msk [vmem:[%s4125_s11 + $0x58] sm:$0xff] %vm2657_vm3, %v2648_v40 }
 0x330   : > { %v2611_v41 = vpop.xlane.xlu1 %2610 }
 0x331   : > { %v2649_v42 = vadd.f32 %v4119_v3, %v2611_v41 }
 0x333   : > { %2670 = vst.msk [vmem:[%s4125_s11 + $0x60] sm:$0xff] %vm2657_vm3, %v2649_v42 }
 0x338   : > { %v2614_v43 = vpop.xlane.xlu2 %2613 }
 0x339   : > { %v2650_v44 = vadd.f32 %v4119_v3, %v2614_v43 }
 0x33b   : > { %2671 = vst.msk [vmem:[%s4125_s11 + $0x68] sm:$0xff] %vm2657_vm3, %v2650_v44 }
 0x340   : > { %v2617_v45 = vpop.xlane.xlu0 %2616 }
 0x341   : > { %v2651_v46 = vadd.f32 %v4119_v3, %v2617_v45 }
 0x343   : > { %2672 = vst.msk [vmem:[%s4125_s11 + $0x70] sm:$0xff] %vm2657_vm3, %v2651_v46 }
 0x349   : > { %v2620_v47 = vpop.xlane.xlu1 %2619 }
 0x34a   : > { %v2652_v48 = vadd.f32 %v4119_v3, %v2620_v47 }
 0x34c   : > { %2673 = vst.msk [vmem:[%s4125_s11 + $0x78] sm:$0xff] %vm2657_vm3, %v2652_v48 }
 0x351   : > { %v2623_v49 = vpop.xlane.xlu2 %2622 }
 0x352   : > { %v2653_v50 = vadd.f32 %v4119_v3, %v2623_v49 }
 0x354   : > { %2674 = vst.msk [vmem:[%s4125_s11 + $0x80] sm:$0xff] %vm2657_vm3, %v2653_v50 }
 0x359   : > { %v2626_v51 = vpop.xlane.xlu0 %2625 }
 0x35a   : > { %v2654_v36 = vadd.f32 %v4119_v3, %v2626_v51 }
 0x35c   : > { %2675 = vst.msk [vmem:[%s4125_s11 + $0x88] sm:$0xff] %vm2657_vm3, %v2654_v36 }
 0x361   : > { %v2629_v52 = vpop.xlane.xlu1 %2628 }
 0x362   : > { %v2655_v54 = vadd.f32 %v4119_v3, %v2629_v52 }
 0x364   : > { %2676 = vst.msk [vmem:[%s4125_s11 + $0x90] sm:$0xff] %vm2657_vm3, %v2655_v54 }
 0x368   : > { %v2632_v56 = vpop.xlane.xlu2 %2631 }
 0x369   : > { %v2656_v57 = vadd.f32 %v4119_v3, %v2632_v56 }
 0x36b   : > { %2677 = vst.msk [vmem:[%s4125_s11 + $0x98] sm:$0xff] %vm2657_vm3, %v2656_v57 }
 0x36c PF: > { %s22_s15 = sadd.s32 1, %s3239_s15  }
 0x36d   : > { %p19_p4 = scmp.ge.s32.totalorder %s22_s15, 4  }
 0x36f   :  { %21 = sbr.rel (!%p19_p4) target bundleno = 3 (0x3), region = 93 }

</bundles_post_ra>
